<compile_context>
chip_gen: v7x
topology: tpu7x:2x2x1
jax: 0.10.0
libtpu: 0.0.40
codegen_flags: <defaults>
</compile_context>

<pallas_src>
import functools

import jax
import jax.numpy as jnp
from jax.experimental import pallas as pl
from jax.experimental.pallas import tpu as pltpu


def _round_up(x, m):
    return ((x + m - 1) // m) * m


def _ds(start, size, stride):
    if stride == 1:
        return pl.ds(start, size)
    return pl.ds(start, size, stride=stride)


# ----------------------------- Pallas kernel ------------------------------- #
def _direct_conv_bn_kernel(x_ref, w_ref, b_ref, o_ref, *, kh, kw, stride,
                           dilation):
    # x_ref: (1, Hp, Wp, Cin)  zero-padded NHWC image (compute dtype).  Its
    #                          block index only depends on the batch grid axis,
    #                          so it is DMA'd once per image and stays resident
    #                          across the (cout-tile, row-tile) axes.
    # w_ref: (kh*kw, Cin, tc)  BN-scale-folded weight tile (compute dtype).
    # b_ref: (1, tc)           folded BN bias (f32; padded lanes are zero).
    # o_ref: (1, th, Wo, tc)   output tile, lane-dense (tc % 128 == 0).
    _, th, wo, tc = o_ref.shape
    cin = x_ref.shape[-1]

    r = pl.program_id(2)                 # row-tile index
    row0 = r * (th * stride)             # first input row for this row tile

    acc = jnp.zeros((th * wo, tc), dtype=jnp.float32)
    for i in range(kh):                  # static unrolled kh*kw taps
        for j in range(kw):
            patch = x_ref[:, _ds(row0 + i * dilation, th, stride),
                          _ds(j * dilation, wo, stride), :]
            acc = acc + jnp.dot(patch.reshape(th * wo, cin),
                                w_ref[i * kw + j],
                                preferred_element_type=jnp.float32)
    out = acc + b_ref[...]               # (th*wo, tc) + (1, tc) broadcast
    o_ref[...] = out.reshape(1, th, wo, tc).astype(o_ref.dtype)


# --------------------------- Tiling / VMEM budget --------------------------- #
def _vmem_capacity_bytes():
    try:
        return int(pltpu.get_tpu_info().vmem_capacity_bytes)
    except Exception:
        return 64 * 1024 * 1024          # conservative default (v7x per-TC VMEM)


def _vmem_estimate(hp, wp, cin, kh, kw, th, wo, tc, cdt_size, out_size):
    """Rough per-step VMEM working set (layout-padded, double-buffered)."""
    x_blk = hp * _round_up(wp, 16) * _round_up(cin, 128) * cdt_size
    w_blk = kh * kw * _round_up(cin, 16) * tc * cdt_size
    o_blk = th * _round_up(wo, 8) * tc * out_size
    acc = _round_up(th * wo, 8) * tc * 4
    patch = _round_up(th * wo, 16) * _round_up(cin, 128) * cdt_size
    return 2 * (x_blk + w_blk + o_blk) + acc + 2 * patch


# ------------------------------ pallas_call -------------------------------- #
def _conv_bn_pallas(x_p, w_kkc, bias_p, *, kh, kw, stride, dilation,
                    Ho, Wo, th, tc, out_dtype, vmem_limit):
    N, Hp, Wp, Cin = x_p.shape
    Cp = w_kkc.shape[-1]
    n_c = Cp // tc
    n_r = pl.cdiv(Ho, th)

    cost = pl.CostEstimate(
        flops=2 * N * Ho * Wo * kh * kw * Cin * Cp,
        transcendentals=0,
        bytes_accessed=(x_p.size * x_p.dtype.itemsize
                        + w_kkc.size * w_kkc.dtype.itemsize
                        + bias_p.size * bias_p.dtype.itemsize
                        + N * Ho * Wo * Cp * jnp.dtype(out_dtype).itemsize),
    )

    kernel = functools.partial(_direct_conv_bn_kernel, kh=kh, kw=kw,
                               stride=stride, dilation=dilation)

    return pl.pallas_call(
        kernel,
        out_shape=jax.ShapeDtypeStruct((N, Ho, Wo, Cp), out_dtype),
        grid_spec=pltpu.PrefetchScalarGridSpec(
            num_scalar_prefetch=0,
            grid=(N, n_c, n_r),
            in_specs=[
                # Whole padded image; block index constant across (c, r) so it
                # is fetched once per image and kept resident in VMEM.
                pl.BlockSpec((1, Hp, Wp, Cin), lambda n, c, r: (n, 0, 0, 0)),
                pl.BlockSpec((kh * kw, Cin, tc), lambda n, c, r: (0, 0, c)),
                pl.BlockSpec((1, tc), lambda n, c, r: (0, c)),
            ],
            out_specs=pl.BlockSpec((1, th, Wo, tc),
                                   lambda n, c, r: (n, r, 0, c)),
        ),
        compiler_params=pltpu.CompilerParams(
            dimension_semantics=("parallel", "parallel", "parallel"),
            vmem_limit_bytes=vmem_limit,
        ),
        cost_estimate=cost,
    )(x_p, w_kkc, bias_p)


# ------------------------------- Host glue --------------------------------- #
def basic_conv2d_nhwc(x_nhwc, weight, gamma, beta, running_mean, running_var,
                      *, stride=1, padding=0, dilation=1, eps=1e-5,
                      compute_dtype=jnp.bfloat16, out_dtype=None):
    """Conv2d(bias=False) + BatchNorm2d (eval), NHWC in / NHWC out.

    `weight` is the PyTorch OIHW tensor.  Calling this entry point directly
    (keeping activations NHWC) avoids the two NCHW<->NHWC HBM round trips of
    the PyTorch-layout wrapper below.
    """
    Cout, Cin, kh, kw = weight.shape
    N, H, W, _ = x_nhwc.shape
    if out_dtype is None:
        out_dtype = x_nhwc.dtype

    dkh = dilation * (kh - 1) + 1
    dkw = dilation * (kw - 1) + 1
    Ho = (H + 2 * padding - dkh) // stride + 1
    Wo = (W + 2 * padding - dkw) // stride + 1
    Cp = _round_up(Cout, 128)
    Wp = W + 2 * padding
    H2p = H + 2 * padding

    cdt = jnp.dtype(compute_dtype).itemsize
    ods = jnp.dtype(out_dtype).itemsize
    capacity = _vmem_capacity_bytes()
    budget = int(capacity * 0.6)

    # Cout tile: lane-dense multiple of 128 that divides Cp; cap the resident
    # (double-buffered) weight tile at ~8 MiB so huge-Cin layers do not squeeze
    # out the row tile.
    tc = min(Cp, 512)
    while tc > 128 and (Cp % tc != 0 or
                        2 * kh * kw * _round_up(Cin, 16) * tc * cdt > (8 << 20)):
        tc -= 128
    n_c = Cp // tc

    # Row tile: start from the full output height, shrink (a) until the grid
    # has >= 4 steps (>= 2 per TensorCore on v7x, and always a next tile to
    # prefetch on single-core v5e/v6e), then (b) until the per-step VMEM
    # working set fits the budget.
    th = Ho
    while N * n_c * pl.cdiv(Ho, th) < 4 and th > 1:
        th = max(1, (th + 1) // 2)
    while True:
        n_r = pl.cdiv(Ho, th)
        # Extra bottom rows so the ragged last row tile's *reads* stay in
        # bounds (its stores are masked by the output BlockSpec).
        Hp = max(H2p, (n_r * th - 1) * stride + dkh)
        est = _vmem_estimate(Hp, Wp, Cin, kh, kw, th, Wo, tc, cdt, ods)
        if th == 1 or est <= budget:
            break
        th = max(1, (th + 1) // 2)

    vmem_limit = int(min(capacity - (4 << 20), max(est + (8 << 20), 32 << 20)))

    # Pad spatially (conv padding + ragged-row-tile slack) and cast to the
    # compute dtype; this is the only activation copy the layer makes.
    x_c = x_nhwc.astype(compute_dtype)
    x_p = jnp.pad(x_c, ((0, 0), (padding, Hp - H - padding),
                        (padding, padding), (0, 0)))

    # Fold BN (eval mode) into the conv: scale -> weight, keep only the bias.
    scale = (gamma.astype(jnp.float32)
             / jnp.sqrt(running_var.astype(jnp.float32) + eps))
    bias = beta.astype(jnp.float32) - running_mean.astype(jnp.float32) * scale

    # (Cout, Cin, kh, kw) -> (kh, kw, Cin, Cout), fold scale, pad Cout to a
    # lane-dense multiple of 128, reshape to (kh*kw, Cin, Cp).
    w = jnp.transpose(weight.astype(jnp.float32), (2, 3, 1, 0)) * scale[None, None, None, :]
    w = jnp.pad(w, ((0, 0), (0, 0), (0, 0), (0, Cp - Cout)))
    w_kkc = w.reshape(kh * kw, Cin, Cp).astype(compute_dtype)
    bias_p = jnp.pad(bias, (0, Cp - Cout)).reshape(1, Cp).astype(jnp.float32)

    out = _conv_bn_pallas(x_p, w_kkc, bias_p, kh=kh, kw=kw, stride=stride,
                          dilation=dilation, Ho=Ho, Wo=Wo, th=th, tc=tc,
                          out_dtype=out_dtype, vmem_limit=vmem_limit)
    return out[..., :Cout]                       # (N, Ho, Wo, Cout)


@functools.partial(
    jax.jit,
    static_argnames=("stride", "padding", "dilation", "eps", "compute_dtype",
                     "out_dtype"),
)
def basic_conv2d(x_nchw, weight, gamma, beta, running_mean, running_var,
                 *, stride=1, padding=0, dilation=1, eps=1e-5,
                 compute_dtype=jnp.bfloat16, out_dtype=None):
    """PyTorch-parity wrapper: NCHW in/out like BasicConv2d.forward."""
    x_nhwc = jnp.transpose(x_nchw, (0, 2, 3, 1))
    y = basic_conv2d_nhwc(x_nhwc, weight, gamma, beta, running_mean,
                          running_var, stride=stride, padding=padding,
                          dilation=dilation, eps=eps,
                          compute_dtype=compute_dtype, out_dtype=out_dtype)
    return jnp.transpose(y, (0, 3, 1, 2))        # NCHW


# --------------------------------- Main ------------------------------------ #
if __name__ == "__main__":
    key = jax.random.PRNGKey(0)
    k_x, k_w, k_g, k_b, k_m, k_v = jax.random.split(key, 6)

    # BasicConv2d(in_planes=4, out_planes=8, kernel_size=3, padding=1)
    N, Cin, H, W = 2, 4, 16, 16
    Cout, ksize, stride, padding, dilation = 8, 3, 1, 1, 1
    eps = 1e-5

    x = jax.random.normal(k_x, (N, Cin, H, W), dtype=jnp.float32)
    weight = 0.1 * jax.random.normal(k_w, (Cout, Cin, ksize, ksize), jnp.float32)
    gamma = 1.0 + 0.1 * jax.random.normal(k_g, (Cout,), jnp.float32)
    beta = 0.1 * jax.random.normal(k_b, (Cout,), jnp.float32)
    running_mean = 0.1 * jax.random.normal(k_m, (Cout,), jnp.float32)
    running_var = jnp.abs(1.0 + 0.1 * jax.random.normal(k_v, (Cout,), jnp.float32))

    out = basic_conv2d(x, weight, gamma, beta, running_mean, running_var,
                       stride=stride, padding=padding, dilation=dilation, eps=eps)
    out = jax.block_until_ready(out)
    assert out.shape == (N, Cout, H, W), out.shape

    scale = gamma / jnp.sqrt(running_var + eps)
    bias = beta - running_mean * scale

    # Reference 1 (tight): replicate the kernel's bf16 compute path exactly
    # (fold scale into weight in f32, cast operands to bf16, accumulate f32).
    w_folded_bf16 = (weight * scale[:, None, None, None]).astype(jnp.bfloat16)
    ref_bf16 = jax.lax.conv_general_dilated(
        x.astype(jnp.bfloat16), w_folded_bf16,
        window_strides=(stride, stride),
        padding=[(padding, padding), (padding, padding)],
        rhs_dilation=(dilation, dilation),
        dimension_numbers=("NCHW", "OIHW", "NCHW"),
        preferred_element_type=jnp.float32,
    ) + bias[None, :, None, None]
    assert jnp.allclose(out, ref_bf16, atol=2e-3, rtol=2e-3), \
        float(jnp.max(jnp.abs(out - ref_bf16)))

    # Reference 2 (loose): full-f32 BasicConv2d semantics (conv + eval BN).
    ref_conv = jax.lax.conv_general_dilated(
        x, weight, window_strides=(stride, stride),
        padding=[(padding, padding), (padding, padding)],
        rhs_dilation=(dilation, dilation),
        dimension_numbers=("NCHW", "OIHW", "NCHW"))
    ref_f32 = ref_conv * scale[None, :, None, None] + bias[None, :, None, None]
    assert jnp.allclose(out, ref_f32, atol=3e-2, rtol=3e-2), \
        float(jnp.max(jnp.abs(out - ref_f32)))

    print("KERNEL_OK")
</pallas_src>

<mosaic_0001>
module attributes {stable_mosaic.version = 11 : i64} {
  func.func @_direct_conv_bn_kernel(%arg0: i32, %arg1: i32, %arg2: i32, %arg3: memref<1x18x18x4xbf16, #tpu.memory_space<vmem>>, %arg4: memref<9x4x128xbf16, #tpu.memory_space<vmem>>, %arg5: memref<1x128xf32, #tpu.memory_space<vmem>>, %arg6: memref<1x8x16x128xf32, #tpu.memory_space<vmem>>) attributes {dimension_semantics = [#tpu.dimension_semantics<parallel>, #tpu.dimension_semantics<parallel>, #tpu.dimension_semantics<parallel>], iteration_bounds = array<i64: 2, 1, 2>, scalar_prefetch = 0 : i64, scratch_operands = 0 : i64, tpu.core_type = #tpu.core_type<tc>, window_params = [{transform_indices = @transform_0, window_bounds = array<i64: 1, 18, 18, 4>}, {transform_indices = @transform_1, window_bounds = array<i64: 9, 4, 128>}, {transform_indices = @transform_2, window_bounds = array<i64: 1, 128>}, {transform_indices = @transform_3, window_bounds = array<i64: 1, 8, 16, 128>}]} {
    %c8_i32 = arith.constant 8 : i32
    %0 = arith.muli %arg2, %c8_i32 : i32
    %cst = arith.constant 0.000000e+00 : f32
    %1 = vector.broadcast %cst : f32 to vector<128x128xf32>
    %c0_i32 = arith.constant 0 : i32
    %2 = arith.addi %0, %c0_i32 : i32
    %c0 = arith.constant 0 : index
    %3 = arith.index_cast %2 : i32 to index
    %c0_0 = arith.constant 0 : index
    %c0_1 = arith.constant 0 : index
    %4 = vector.load %arg3[%c0, %3, %c0_0, %c0_1] : memref<1x18x18x4xbf16, #tpu.memory_space<vmem>>, vector<1x8x16x4xbf16>
    %5 = vector.shape_cast %4 : vector<1x8x16x4xbf16> to vector<128x4xbf16>
    %c0_2 = arith.constant 0 : index
    %c0_3 = arith.constant 0 : index
    %c0_4 = arith.constant 0 : index
    %6 = vector.load %arg4[%c0_2, %c0_3, %c0_4] : memref<9x4x128xbf16, #tpu.memory_space<vmem>>, vector<1x4x128xbf16>
    %7 = vector.shape_cast %6 : vector<1x4x128xbf16> to vector<4x128xbf16>
    %cst_5 = arith.constant dense<0.000000e+00> : vector<128x128xf32>
    %8 = tpu.matmul %5, %7, %cst_5 {dimension_numbers = #tpu.dot_dimension_numbers<[1], [0], [0], [1], [0, 0, 1, 1], [], []>} : vector<128x4xbf16>, vector<4x128xbf16>, vector<128x128xf32> -> vector<128x128xf32>
    %9 = arith.addf %1, %8 : vector<128x128xf32>
    %c0_i32_6 = arith.constant 0 : i32
    %10 = arith.addi %0, %c0_i32_6 : i32
    %c0_7 = arith.constant 0 : index
    %11 = arith.index_cast %10 : i32 to index
    %c1 = arith.constant 1 : index
    %c0_8 = arith.constant 0 : index
    %12 = vector.load %arg3[%c0_7, %11, %c1, %c0_8] : memref<1x18x18x4xbf16, #tpu.memory_space<vmem>>, vector<1x8x16x4xbf16>
    %13 = vector.shape_cast %12 : vector<1x8x16x4xbf16> to vector<128x4xbf16>
    %c1_9 = arith.constant 1 : index
    %c0_10 = arith.constant 0 : index
    %c0_11 = arith.constant 0 : index
    %14 = vector.load %arg4[%c1_9, %c0_10, %c0_11] : memref<9x4x128xbf16, #tpu.memory_space<vmem>>, vector<1x4x128xbf16>
    %15 = vector.shape_cast %14 : vector<1x4x128xbf16> to vector<4x128xbf16>
    %cst_12 = arith.constant dense<0.000000e+00> : vector<128x128xf32>
    %16 = tpu.matmul %13, %15, %cst_12 {dimension_numbers = #tpu.dot_dimension_numbers<[1], [0], [0], [1], [0, 0, 1, 1], [], []>} : vector<128x4xbf16>, vector<4x128xbf16>, vector<128x128xf32> -> vector<128x128xf32>
    %17 = arith.addf %9, %16 : vector<128x128xf32>
    %c0_i32_13 = arith.constant 0 : i32
    %18 = arith.addi %0, %c0_i32_13 : i32
    %c0_14 = arith.constant 0 : index
    %19 = arith.index_cast %18 : i32 to index
    %c2 = arith.constant 2 : index
    %c0_15 = arith.constant 0 : index
    %20 = vector.load %arg3[%c0_14, %19, %c2, %c0_15] : memref<1x18x18x4xbf16, #tpu.memory_space<vmem>>, vector<1x8x16x4xbf16>
    %21 = vector.shape_cast %20 : vector<1x8x16x4xbf16> to vector<128x4xbf16>
    %c2_16 = arith.constant 2 : index
    %c0_17 = arith.constant 0 : index
    %c0_18 = arith.constant 0 : index
    %22 = vector.load %arg4[%c2_16, %c0_17, %c0_18] : memref<9x4x128xbf16, #tpu.memory_space<vmem>>, vector<1x4x128xbf16>
    %23 = vector.shape_cast %22 : vector<1x4x128xbf16> to vector<4x128xbf16>
    %cst_19 = arith.constant dense<0.000000e+00> : vector<128x128xf32>
    %24 = tpu.matmul %21, %23, %cst_19 {dimension_numbers = #tpu.dot_dimension_numbers<[1], [0], [0], [1], [0, 0, 1, 1], [], []>} : vector<128x4xbf16>, vector<4x128xbf16>, vector<128x128xf32> -> vector<128x128xf32>
    %25 = arith.addf %17, %24 : vector<128x128xf32>
    %c1_i32 = arith.constant 1 : i32
    %26 = arith.addi %0, %c1_i32 : i32
    %c0_20 = arith.constant 0 : index
    %27 = arith.index_cast %26 : i32 to index
    %c0_21 = arith.constant 0 : index
    %c0_22 = arith.constant 0 : index
    %28 = vector.load %arg3[%c0_20, %27, %c0_21, %c0_22] : memref<1x18x18x4xbf16, #tpu.memory_space<vmem>>, vector<1x8x16x4xbf16>
    %29 = vector.shape_cast %28 : vector<1x8x16x4xbf16> to vector<128x4xbf16>
    %c3 = arith.constant 3 : index
    %c0_23 = arith.constant 0 : index
    %c0_24 = arith.constant 0 : index
    %30 = vector.load %arg4[%c3, %c0_23, %c0_24] : memref<9x4x128xbf16, #tpu.memory_space<vmem>>, vector<1x4x128xbf16>
    %31 = vector.shape_cast %30 : vector<1x4x128xbf16> to vector<4x128xbf16>
    %cst_25 = arith.constant dense<0.000000e+00> : vector<128x128xf32>
    %32 = tpu.matmul %29, %31, %cst_25 {dimension_numbers = #tpu.dot_dimension_numbers<[1], [0], [0], [1], [0, 0, 1, 1], [], []>} : vector<128x4xbf16>, vector<4x128xbf16>, vector<128x128xf32> -> vector<128x128xf32>
    %33 = arith.addf %25, %32 : vector<128x128xf32>
    %c1_i32_26 = arith.constant 1 : i32
    %34 = arith.addi %0, %c1_i32_26 : i32
    %c0_27 = arith.constant 0 : index
    %35 = arith.index_cast %34 : i32 to index
    %c1_28 = arith.constant 1 : index
    %c0_29 = arith.constant 0 : index
    %36 = vector.load %arg3[%c0_27, %35, %c1_28, %c0_29] : memref<1x18x18x4xbf16, #tpu.memory_space<vmem>>, vector<1x8x16x4xbf16>
    %37 = vector.shape_cast %36 : vector<1x8x16x4xbf16> to vector<128x4xbf16>
    %c4 = arith.constant 4 : index
    %c0_30 = arith.constant 0 : index
    %c0_31 = arith.constant 0 : index
    %38 = vector.load %arg4[%c4, %c0_30, %c0_31] : memref<9x4x128xbf16, #tpu.memory_space<vmem>>, vector<1x4x128xbf16>
    %39 = vector.shape_cast %38 : vector<1x4x128xbf16> to vector<4x128xbf16>
    %cst_32 = arith.constant dense<0.000000e+00> : vector<128x128xf32>
    %40 = tpu.matmul %37, %39, %cst_32 {dimension_numbers = #tpu.dot_dimension_numbers<[1], [0], [0], [1], [0, 0, 1, 1], [], []>} : vector<128x4xbf16>, vector<4x128xbf16>, vector<128x128xf32> -> vector<128x128xf32>
    %41 = arith.addf %33, %40 : vector<128x128xf32>
    %c1_i32_33 = arith.constant 1 : i32
    %42 = arith.addi %0, %c1_i32_33 : i32
    %c0_34 = arith.constant 0 : index
    %43 = arith.index_cast %42 : i32 to index
    %c2_35 = arith.constant 2 : index
    %c0_36 = arith.constant 0 : index
    %44 = vector.load %arg3[%c0_34, %43, %c2_35, %c0_36] : memref<1x18x18x4xbf16, #tpu.memory_space<vmem>>, vector<1x8x16x4xbf16>
    %45 = vector.shape_cast %44 : vector<1x8x16x4xbf16> to vector<128x4xbf16>
    %c5 = arith.constant 5 : index
    %c0_37 = arith.constant 0 : index
    %c0_38 = arith.constant 0 : index
    %46 = vector.load %arg4[%c5, %c0_37, %c0_38] : memref<9x4x128xbf16, #tpu.memory_space<vmem>>, vector<1x4x128xbf16>
    %47 = vector.shape_cast %46 : vector<1x4x128xbf16> to vector<4x128xbf16>
    %cst_39 = arith.constant dense<0.000000e+00> : vector<128x128xf32>
    %48 = tpu.matmul %45, %47, %cst_39 {dimension_numbers = #tpu.dot_dimension_numbers<[1], [0], [0], [1], [0, 0, 1, 1], [], []>} : vector<128x4xbf16>, vector<4x128xbf16>, vector<128x128xf32> -> vector<128x128xf32>
    %49 = arith.addf %41, %48 : vector<128x128xf32>
    %c2_i32 = arith.constant 2 : i32
    %50 = arith.addi %0, %c2_i32 : i32
    %c0_40 = arith.constant 0 : index
    %51 = arith.index_cast %50 : i32 to index
    %c0_41 = arith.constant 0 : index
    %c0_42 = arith.constant 0 : index
    %52 = vector.load %arg3[%c0_40, %51, %c0_41, %c0_42] : memref<1x18x18x4xbf16, #tpu.memory_space<vmem>>, vector<1x8x16x4xbf16>
    %53 = vector.shape_cast %52 : vector<1x8x16x4xbf16> to vector<128x4xbf16>
    %c6 = arith.constant 6 : index
    %c0_43 = arith.constant 0 : index
    %c0_44 = arith.constant 0 : index
    %54 = vector.load %arg4[%c6, %c0_43, %c0_44] : memref<9x4x128xbf16, #tpu.memory_space<vmem>>, vector<1x4x128xbf16>
    %55 = vector.shape_cast %54 : vector<1x4x128xbf16> to vector<4x128xbf16>
    %cst_45 = arith.constant dense<0.000000e+00> : vector<128x128xf32>
    %56 = tpu.matmul %53, %55, %cst_45 {dimension_numbers = #tpu.dot_dimension_numbers<[1], [0], [0], [1], [0, 0, 1, 1], [], []>} : vector<128x4xbf16>, vector<4x128xbf16>, vector<128x128xf32> -> vector<128x128xf32>
    %57 = arith.addf %49, %56 : vector<128x128xf32>
    %c2_i32_46 = arith.constant 2 : i32
    %58 = arith.addi %0, %c2_i32_46 : i32
    %c0_47 = arith.constant 0 : index
    %59 = arith.index_cast %58 : i32 to index
    %c1_48 = arith.constant 1 : index
    %c0_49 = arith.constant 0 : index
    %60 = vector.load %arg3[%c0_47, %59, %c1_48, %c0_49] : memref<1x18x18x4xbf16, #tpu.memory_space<vmem>>, vector<1x8x16x4xbf16>
    %61 = vector.shape_cast %60 : vector<1x8x16x4xbf16> to vector<128x4xbf16>
    %c7 = arith.constant 7 : index
    %c0_50 = arith.constant 0 : index
    %c0_51 = arith.constant 0 : index
    %62 = vector.load %arg4[%c7, %c0_50, %c0_51] : memref<9x4x128xbf16, #tpu.memory_space<vmem>>, vector<1x4x128xbf16>
    %63 = vector.shape_cast %62 : vector<1x4x128xbf16> to vector<4x128xbf16>
    %cst_52 = arith.constant dense<0.000000e+00> : vector<128x128xf32>
    %64 = tpu.matmul %61, %63, %cst_52 {dimension_numbers = #tpu.dot_dimension_numbers<[1], [0], [0], [1], [0, 0, 1, 1], [], []>} : vector<128x4xbf16>, vector<4x128xbf16>, vector<128x128xf32> -> vector<128x128xf32>
    %65 = arith.addf %57, %64 : vector<128x128xf32>
    %c2_i32_53 = arith.constant 2 : i32
    %66 = arith.addi %0, %c2_i32_53 : i32
    %c0_54 = arith.constant 0 : index
    %67 = arith.index_cast %66 : i32 to index
    %c2_55 = arith.constant 2 : index
    %c0_56 = arith.constant 0 : index
    %68 = vector.load %arg3[%c0_54, %67, %c2_55, %c0_56] : memref<1x18x18x4xbf16, #tpu.memory_space<vmem>>, vector<1x8x16x4xbf16>
    %69 = vector.shape_cast %68 : vector<1x8x16x4xbf16> to vector<128x4xbf16>
    %c8 = arith.constant 8 : index
    %c0_57 = arith.constant 0 : index
    %c0_58 = arith.constant 0 : index
    %70 = vector.load %arg4[%c8, %c0_57, %c0_58] : memref<9x4x128xbf16, #tpu.memory_space<vmem>>, vector<1x4x128xbf16>
    %71 = vector.shape_cast %70 : vector<1x4x128xbf16> to vector<4x128xbf16>
    %cst_59 = arith.constant dense<0.000000e+00> : vector<128x128xf32>
    %72 = tpu.matmul %69, %71, %cst_59 {dimension_numbers = #tpu.dot_dimension_numbers<[1], [0], [0], [1], [0, 0, 1, 1], [], []>} : vector<128x4xbf16>, vector<4x128xbf16>, vector<128x128xf32> -> vector<128x128xf32>
    %73 = arith.addf %65, %72 : vector<128x128xf32>
    %c0_60 = arith.constant 0 : index
    %c0_61 = arith.constant 0 : index
    %74 = vector.load %arg5[%c0_60, %c0_61] : memref<1x128xf32, #tpu.memory_space<vmem>>, vector<1x128xf32>
    %75 = vector.broadcast %74 : vector<1x128xf32> to vector<128x128xf32>
    %76 = arith.addf %73, %75 : vector<128x128xf32>
    %77 = vector.shape_cast %76 : vector<128x128xf32> to vector<1x8x16x128xf32>
    %c0_62 = arith.constant 0 : index
    %c0_63 = arith.constant 0 : index
    %c0_64 = arith.constant 0 : index
    %c0_65 = arith.constant 0 : index
    %78 = vector.load %arg6[%c0_62, %c0_63, %c0_64, %c0_65] : memref<1x8x16x128xf32, #tpu.memory_space<vmem>>, vector<1x8x16x128xf32>
    tpu.vector_store %arg6[%c0_62, %c0_63, %c0_64, %c0_65], %77 {strides = array<i32>} : memref<1x8x16x128xf32, #tpu.memory_space<vmem>>, vector<1x8x16x128xf32>,
    return
  }
  func.func @transform_0(%arg0: i32, %arg1: i32, %arg2: i32) -> (i32, i32, i32, i32) {
    %c0_i32 = arith.constant 0 : i32
    %c0_i32_0 = arith.constant 0 : i32
    %c0_i32_1 = arith.constant 0 : i32
    %c0_i32_2 = arith.constant 0 : i32
    return %arg0, %c0_i32, %c0_i32_0, %c0_i32_1 : i32, i32, i32, i32
  }
  func.func @transform_1(%arg0: i32, %arg1: i32, %arg2: i32) -> (i32, i32, i32) {
    %c0_i32 = arith.constant 0 : i32
    %c0_i32_0 = arith.constant 0 : i32
    %c0_i32_1 = arith.constant 0 : i32
    return %c0_i32, %c0_i32_0, %arg1 : i32, i32, i32
  }
  func.func @transform_2(%arg0: i32, %arg1: i32, %arg2: i32) -> (i32, i32) {
    %c0_i32 = arith.constant 0 : i32
    %c0_i32_0 = arith.constant 0 : i32
    return %c0_i32, %arg1 : i32, i32
  }
  func.func @transform_3(%arg0: i32, %arg1: i32, %arg2: i32) -> (i32, i32, i32, i32) {
    %c0_i32 = arith.constant 0 : i32
    %c0_i32_0 = arith.constant 0 : i32
    return %arg0, %arg2, %c0_i32, %arg1 : i32, i32, i32, i32
  }
}

</mosaic_0001>

<bundles_post_ra>
// kernel: basic_conv2d.1
= control target key start
LH: loop header
LB: loop body
LE: loop exit
PB: predicated region body
PF: predicated region fallthrough
CT: control target
= control target key end

     0   :  { %s3691_s12 = smov 0   ;;  %s3693_s13 = smov 0   ;;  %s4646_s0 = inlined_call_operand.vmem [shape: bf16[2,18,18,4], index: 0, kind: input, shape index: {}]   ;;  %s4647_s1 = inlined_call_operand.vmem [shape: bf16[9,4,128], index: 1, kind: input, shape index: {}]   ;;  %s4648_s2 = inlined_call_operand.vmem [shape: f32[1,128], index: 2, kind: input, shape index: {}]   ;;  %s4649_s3 = inlined_call_operand.vmem [shape: f32[2,16,16,128], index: 3, kind: output, shape index: {}]  }
   0x1   :  { %s3695_s14 = smov 0   ;;  %s3697_s15 = smov 0  }
   0x2   :  { %s3699_s16 = smov 0  }
   0x3 LB: > { %s25_s17 = sadd.s32 1, %s3661_s14  ;;  %s32_s18 = sadd.s32 1, %s3665_s15  ;;  %s3669_s16 = sphi %s3699_s16, %s13_s16   ;;  %s3665_s15 = sphi %s3697_s15, %s4675_s15   ;;  %s3661_s14 = sphi %s3695_s14, %s4674_s14   ;;  %s3657_s13 = sphi %s3693_s13, %s4673_s13   ;;  %s3653_s12 = sphi %s3691_s12, %s4672_s12  }
   0x4   : > { %p26_p0 = scmp.ge.s32.totalorder %s25_s17, 2  ;;  %p2893_p1 = scmp.ge.s32.totalorder %s3669_s16, 1 }
   0x5   : > { %p177_p2 = scmp.lt.s32.totalorder %s3669_s16, 5 }
   0x6   : > { %s4677_s17 = smov (%p26_p0, %s25_s17), 0  ;;  %s4679_s18 = smov (!%p26_p0, %s32_s18), %s3665_s15 }
   0x7   : > { %p178_p3 = pnand %p2893_p1, %p177_p2  ;;  %p34_p4 = scmp.ge.s32.totalorder %s4679_s18, 2 }
   0x9   : > { %s4681_s18 = smov (%p34_p4, %s4679_s18), 0  ;;  %181 = sbr.rel (%p178_p3) target bundleno = 419 (0x1a3), region = 32 }
  0x10   : > { %v2902_v0 = vld [vmem:[%s4647_s1 + $0x2] sm:$0x3]  ;;  %vm518_vm0 = vcmask 1041408   ;;  %v3019_v1 = vld [vmem:[%s4647_s1 + $0x8] sm:$0x3]  ;;  %p216_p5 = scmp.lt.s32.totalorder %s3657_s13, 1 }
  0x11   : > { %3555 = vmatprep.subr.msk.bf16.mxu1 %vm518_vm0, %v2902_v0  ;;  %3559 = vmatprep.subr.msk.bf16.mxu0 %vm518_vm0, %v3019_v1  ;;  %v520_v2 = vsel %vm518_vm0, %v2902_v0, 0  ;;  %v3733_v3 = vsel %vm518_vm0, %v3019_v1, 0  ;;  %v263_v4 = vld [vmem:[%s4647_s1] sm:$0x3]  ;;  %s3181_s25 = smul.u32 96, %s3653_s12  ;;  %vm493_vm3 = vcmask 31744  }
  0x12   : > { %3264 = vmatpush3.bf16.msra.mxu1 %v520_v2  ;;  %3336 = vmatpush3.bf16.msra.mxu0 %v3733_v3  ;;  %s4683_s13 = smov (!%p216_p5, %s3657_s13), 1  ;;  %v3052_v5 = vld [vmem:[%s4647_s1 + $0xa] sm:$0x3]  ;;  %vm272_vm1 = vsmask.f32 3328  ;;  %v3775_v17 = vsel %vm518_vm0, %v263_v4, 0 }
  0x13   : > { %3556 = vmatprep.subr.msk.bf16.mxu1 %vm518_vm0, %v263_v4  ;;  %s3565_s28 = smul.u32 216, %s4683_s13  ;;  %3561 = vmatprep.subr.msk.bf16.mxu0 %vm518_vm0, %v3052_v5  ;;  %vm273_vm2 = vsmask.f32 7440  ;;  %v3781_v26 = vld [vmem:[%s4647_s1 + $0xc] sm:$0x3]  ;;  %v3798_v37 = vsel %vm518_vm0, %v3052_v5, 0 }
  0x14   : > { %vm3790_vm4 = vmor %vm272_vm1, %vm273_vm2  ;;  %v3802_v41 = vsel %vm518_vm0, %v3781_v26, 0  ;;  %vm807_vm5 = vcmask 1042432   ;;  %vm808_vm6 = vcmask 1046532   ;;  %s2897_s27 = sshll.u32 %s4683_s13, 5 }
  0x15   : > { %s220_s4 = scalar_lea.vmem %s4646_s0, %s3565_s28  ;;  %vm3945_vm7 = vmor %vm807_vm5, %vm808_vm6 }
  0x16   : > { %s3751_s5 = scalar_lea.vmem %s220_s4, %s3181_s25  ;;  %s2895_s25 = sshll.u32 %s3653_s12, 3 }
  0x17   : > { %v3754_v6 = vld [vmem:[%s3751_s5] sm:$0xf]  ;;  %v3757_v7 = vld [vmem:[%s3751_s5 + $0x4] sm:$0xf]  ;;  %v3760_v8 = vld [vmem:[%s3751_s5 + $0x8] sm:$0x1] }
  0x18   : > { %v276_v9 = vshrl.u32 %v3754_v6, 16  ;;  %v279_v10 = vshll.u32 %v3754_v6, 16  ;;  %v285_v11 = vshll.u32 %v3757_v7, 16  ;;  %v289_v12 = vshrl.u32 %v3757_v7, 16  ;;  %v2995_v13 = vld [vmem:[%s3751_s5 + $0xc] sm:$0xf] }
  0x19   : > { %v295_v14 = vshll.u32 %v3760_v8, 16  ;;  %v3769_v15 = vld [vmem:[%s3751_s5 + $0x10] sm:$0xf]  ;;  %v3772_v16 = vld [vmem:[%s3751_s5 + $0x14] sm:$0x1]  ;;  %v1259_v23 = vshrl.u32 %v2995_v13, 16 }
  0x1a   : > { %v278_v18 = vrot.slane %v276_v9, 4  ;;  %v281_v19 = vrot.slane %v279_v10, 5  ;;  %v287_v20 = vrot.slane %v285_v11, 5  ;;  %v291_v21 = vrot.slane %v289_v12, 4  ;;  %v3786_v31 = vld [vmem:[%s3751_s5 + $0xc] sm:$0xf] }
  0x1b   : > { %v297_v22 = vrot.slane %v295_v14, 5  ;;  %v1262_v24 = vshll.u32 %v2995_v13, 16  ;;  %v1268_v25 = vshll.u32 %v3769_v15, 16  ;;  %v1272_v29 = vshrl.u32 %v3769_v15, 16  ;;  %v3795_v36 = vld [vmem:[%s3751_s5 + $0x10] sm:$0xf] }
  0x1c   : > { %v282_v27 = vor.u32 %v281_v19, %v278_v18  ;;  %v292_v28 = vor.u32 %v291_v21, %v287_v20  ;;  %v1278_v30 = vshll.u32 %v3772_v16, 16  ;;  %v1261_v33 = vrot.slane %v1259_v23, 4  ;;  %v3805_v44 = vld [vmem:[%s3751_s5 + $0x14] sm:$0x1]  ;;  %v2998_v55 = vld [vmem:[%s3751_s5 + $0x18] sm:$0xf] }
  0x1d   : > { %v1264_v34 = vrot.slane %v1262_v24, 5  ;;  %v1270_v35 = vrot.slane %v1268_v25, 5  ;;  %v1274_v40 = vrot.slane %v1272_v29, 4  ;;  %v300_v45 = vshrl.u32 %v3786_v31, 16  ;;  %v3818_v60 = vld [vmem:[%s3751_s5 + $0x1c] sm:$0xf] }
  0x1e   : > { %v283_v38 = vrot.slane %v282_v27, 4  ;;  %v293_v39 = vrot.slane %v292_v28, 4  ;;  %v1280_v43 = vrot.slane %v1278_v30, 5  ;;  %v303_v46 = vshll.u32 %v3786_v31, 16  ;;  %v3826_v1 = vld [vmem:[%s3751_s5 + $0x20] sm:$0x1] }
  0x1f   : > { %v1265_v42 = vor.u32 %v1264_v34, %v1261_v33  ;;  %v1275_v49 = vor.u32 %v1274_v40, %v1270_v35  ;;  %v309_v50 = vshll.u32 %v3795_v36, 16  ;;  %v302_v53 = vrot.slane %v300_v45, 4  ;;  %v3834_v21 = vld [vmem:[%s3751_s5 + $0x18] sm:$0xf]  ;;  %v3841_v27 = vld [vmem:[%s3751_s5 + $0x1c] sm:$0xf] }
  0x20   : > { %v288_v47 = vsel %vm3790_vm4, %v283_v38, %v287_v20  ;;  %v298_v48 = vsel %vm3790_vm4, %v293_v39, %v297_v22  ;;  %v305_v54 = vrot.slane %v303_v46, 5  ;;  %v313_v58 = vshrl.u32 %v3795_v36, 16  ;;  %v3849_v38 = vld [vmem:[%s3751_s5 + $0x20] sm:$0x1]  ;;  %p231_p6 = scmp.lt.s32.totalorder %s2895_s25, 15 }
  0x21   : > { %v2903_v51 = vcombine.low %v288_v47, %v298_v48  ;;  %v1266_v52 = vrot.slane %v1265_v42, 4  ;;  %v1276_v56 = vrot.slane %v1275_v49, 4  ;;  %v311_v57 = vrot.slane %v309_v50, 5  ;;  %v3001_v47 = vld [vmem:[%s3751_s5 + $0x24] sm:$0xf] }
  0x22   : > { %v319_v59 = vshll.u32 %v3805_v44, 16  ;;  %v1650_v62 = vrot.slane %v3769_v15, 5  ;;  %v1653_v63 = vrot.slane %v3772_v16, 5  ;;  %v306_v0 = vor.u32 %v305_v54, %v302_v53  ;;  %s4685_s25 = smov (!%p231_p6, %s2895_s25), 15 }
  0x23   : > { %3265 = vmatprep.mubr.msk.bf16.mxu1 %vm493_vm3, %v2903_v51  ;;  %v1271_v61 = vsel %vm3790_vm4, %v1266_v52, %v1270_v35  ;;  %v1281_v2 = vsel %vm3790_vm4, %v1276_v56, %v1280_v43  ;;  %v315_v4 = vrot.slane %v313_v58, 4  ;;  %v1283_v9 = vshrl.u32 %v2998_v55, 16  ;;  %v3859_v52 = vld [vmem:[%s3751_s5 + $0x28] sm:$0xf]  ;;  %s2896_s26 = sshll.u32 %s4685_s25, 1 }
  0x24   : > { %v321_v5 = vrot.slane %v319_v59, 5  ;;  %v3020_v10 = vcombine.low %v1271_v61, %v1281_v2  ;;  %v307_v11 = vrot.slane %v306_v0, 4  ;;  %v1286_v12 = vshll.u32 %v2998_v55, 16  ;;  %v3871_v61 = vld [vmem:[%s3751_s5 + $0x2c] sm:$0x1]  ;;  %s238_s28 = sadd.s32 %s2897_s27, %s2896_s26 }
  0x25   : > { %v1292_v13 = vshll.u32 %v3818_v60, 16  ;;  %v316_v14 = vor.u32 %v315_v4, %v311_v57  ;;  %v1285_v18 = vrot.slane %v1283_v9, 4  ;;  %v1296_v19 = vshrl.u32 %v3818_v60, 16  ;;  %s2898_s29 = sshll.u32 %s238_s28, 3 }
  0x26   : > { %v1302_v20 = vshll.u32 %v3826_v1, 16  ;;  %3337 = vmatprep.mubr.msk.bf16.mxu0 %vm493_vm3, %v3020_v10  ;;  %v312_v22 = vsel %vm3790_vm4, %v307_v11, %v311_v57  ;;  %v1288_v23 = vrot.slane %v1286_v12, 5  ;;  %v1657_v25 = vrot.slane %v3818_v60, 5  ;;  %v3865_v57 = vld [vmem:[%s4647_s1 + $0x4] sm:$0x3]  ;;  %s4597_s6 = scalar_lea.vmem %s4649_s3, %s2898_s29 }
  0x27   : > { %v1294_v24 = vrot.slane %v1292_v13, 5  ;;  %v317_v28 = vrot.slane %v316_v14, 4  ;;  %v1298_v29 = vrot.slane %v1296_v19, 4  ;;  %v1660_v33 = vrot.slane %v3826_v1, 5  ;;  %v3878_v11 = vld [vmem:[%s3751_s5 + $0x24] sm:$0xf] }
  0x28   : > { %v1304_v30 = vrot.slane %v1302_v20, 5  ;;  %v1289_v34 = vor.u32 %v1288_v23, %v1285_v18  ;;  %v3846_v35 = vrot.slane %v1657_v25, 4  ;;  %v324_v39 = vshrl.u32 %v3834_v21, 16  ;;  %v3881_v19 = vld [vmem:[%s3751_s5 + $0x28] sm:$0xf] }
  0x29   : > { %v327_v40 = vshll.u32 %v3834_v21, 16  ;;  %v322_v42 = vsel %vm3790_vm4, %v317_v28, %v321_v5  ;;  %v1299_v43 = vor.u32 %v1298_v29, %v1294_v24  ;;  %v333_v45 = vshll.u32 %v3841_v27, 16  ;;  %v3891_v29 = vld [vmem:[%s3751_s5 + $0x2c] sm:$0x1] }
  0x2a   : > { %v337_v46 = vshrl.u32 %v3841_v27, 16  ;;  %v2904_v48 = vcombine.low %v312_v22, %v322_v42  ;;  %v1290_v49 = vrot.slane %v1289_v34, 4  ;;  %v326_v50 = vrot.slane %v324_v39, 4 }
  0x2b   : > { %v329_v51 = vrot.slane %v327_v40, 5  ;;  %v1300_v53 = vrot.slane %v1299_v43, 4  ;;  %v335_v54 = vrot.slane %v333_v45, 5  ;;  %v343_v56 = vshll.u32 %v3849_v38, 16  ;;  %v3004_v45 = vld [vmem:[%s3751_s5 + $0x30] sm:$0xf] }
  0x2c   : > { %v339_v55 = vrot.slane %v337_v46, 4  ;;  %3266 = vmatmul.mubr.msk.bf16.vlgmr.msra.gmra.mrb[0].mxu1 %vm493_vm3, %v2904_v48  ;;  %v1295_v58 = vsel %vm3790_vm4, %v1290_v49, %v1294_v24  ;;  %v1307_v0 = vshrl.u32 %v3001_v47, 16  ;;  %v1310_v2 = vshll.u32 %v3001_v47, 16 }
  0x2d   : > { %v330_v59 = vor.u32 %v329_v51, %v326_v50  ;;  %3282 = vmatpush3.bf16.msra.mxu1 %v3775_v17  ;;  %v1305_v4 = vsel %vm3790_vm4, %v1300_v53, %v1304_v30  ;;  %v345_v9 = vrot.slane %v343_v56, 5  ;;  %v1316_v10 = vshll.u32 %v3859_v52, 16  ;;  %v3901_v50 = vld [vmem:[%s3751_s5 + $0x34] sm:$0xf] }
  0x2e   : > { %v340_v5 = vor.u32 %v339_v55, %v335_v54  ;;  %v3021_v12 = vcombine.low %v1295_v58, %v1305_v4  ;;  %v1309_v14 = vrot.slane %v1307_v0, 4  ;;  %v1312_v18 = vrot.slane %v1310_v2, 5  ;;  %3557 = vmatprep.subr.msk.bf16.mxu1 %vm518_vm0, %v3865_v57  ;;  %v3911_v58 = vld [vmem:[%s3751_s5 + $0x38] sm:$0x1] }
  0x2f   : > { %v331_v13 = vrot.slane %v330_v59, 4  ;;  %v1318_v20 = vrot.slane %v1316_v10, 5  ;;  %v1320_v22 = vshrl.u32 %v3859_v52, 16  ;;  %v1326_v23 = vshll.u32 %v3871_v61, 16 }
  0x30   : > { %v341_v17 = vrot.slane %v340_v5, 4  ;;  %3338 = vmatmul.mubr.msk.bf16.vlgmr.msra.gmra.mrb[0].mxu0 %vm493_vm3, %v3021_v12  ;;  %v1313_v28 = vor.u32 %v1312_v18, %v1309_v14  ;;  %v348_v30 = vshrl.u32 %v3878_v11, 16  ;;  %v351_v34 = vshll.u32 %v3878_v11, 16  ;;  %v3916_v14 = vld [vmem:[%s3751_s5 + $0x30] sm:$0xf] }
  0x31   : > { %v336_v24 = vsel %vm3790_vm4, %v331_v13, %v335_v54  ;;  %3354 = vmatpush3.bf16.msra.mxu0 %v3798_v37  ;;  %v1322_v40 = vrot.slane %v1320_v22, 4  ;;  %v1328_v42 = vrot.slane %v1326_v23, 5  ;;  %v357_v43 = vshll.u32 %v3881_v19, 16  ;;  %v3922_v23 = vld [vmem:[%s3751_s5 + $0x34] sm:$0xf] }
  0x32   : > { %v346_v39 = vsel %vm3790_vm4, %v341_v17, %v345_v9  ;;  %v1314_v47 = vrot.slane %v1313_v28, 4  ;;  %v350_v48 = vrot.slane %v348_v30, 4  ;;  %v353_v49 = vrot.slane %v351_v34, 5  ;;  %3562 = vmatprep.subr.msk.bf16.mxu0 %vm518_vm0, %v3781_v26 }
  0x33   : > { %v2905_v46 = vcombine.low %v336_v24, %v346_v39  ;;  %v1323_v37 = vor.u32 %v1322_v40, %v1318_v20  ;;  %v359_v51 = vrot.slane %v357_v43, 5  ;;  %v361_v53 = vshrl.u32 %v3881_v19, 16  ;;  %v3927_v39 = vld [vmem:[%s3751_s5 + $0x38] sm:$0x1] }
  0x34   : > { %v367_v54 = vshll.u32 %v3891_v29, 16  ;;  %v1319_v55 = vsel %vm3790_vm4, %v1314_v47, %v1318_v20  ;;  %v354_v56 = vor.u32 %v353_v49, %v350_v48  ;;  %v1331_v59 = vshrl.u32 %v3004_v45, 16 }
  0x35   : > { %3269 = vmatprep.mubr.msk.bf16.mxu1 %vm493_vm3, %v2905_v46  ;;  %v1334_v0 = vshll.u32 %v3004_v45, 16  ;;  %v1324_v2 = vrot.slane %v1323_v37, 4  ;;  %v363_v26 = vrot.slane %v361_v53, 4  ;;  %v1340_v5 = vshll.u32 %v3901_v50, 16  ;;  %v3036_v37 = vld [vmem:[%s3751_s5 + $0xc] sm:$0xe] }
  0x36   : > { %v369_v4 = vrot.slane %v367_v54, 5  ;;  %v355_v9 = vrot.slane %v354_v56, 4  ;;  %v1333_v10 = vrot.slane %v1331_v59, 4  ;;  %v1344_v13 = vshrl.u32 %v3901_v50, 16  ;;  %v3939_v56 = vld [vmem:[%s3751_s5 + $0x3c] sm:$0xf] }
  0x37   : > { %v1336_v12 = vrot.slane %v1334_v0, 5  ;;  %v1329_v18 = vsel %vm3790_vm4, %v1324_v2, %v1328_v42  ;;  %v364_v17 = vor.u32 %v363_v26, %v359_v51  ;;  %v1342_v20 = vrot.slane %v1340_v5, 5 }
  0x38   : > { %v1350_v22 = vshll.u32 %v3911_v58, 16  ;;  %v3022_v24 = vcombine.low %v1319_v55, %v1329_v18  ;;  %v360_v28 = vsel %vm3790_vm4, %v355_v9, %v359_v51  ;;  %v1346_v34 = vrot.slane %v1344_v13, 4  ;;  %v3953_v18 = vld [vmem:[%s3751_s5 + $0x44] sm:$0x1] }
  0x39   : > { %v1337_v30 = vor.u32 %v1336_v12, %v1333_v10  ;;  %v365_v40 = vrot.slane %v364_v17, 4  ;;  %v372_v42 = vshrl.u32 %v3916_v14, 16  ;;  %v375_v45 = vshll.u32 %v3916_v14, 16  ;;  %v3037_v17 = vld [vmem:[%s3751_s5 + $0x18] sm:$0xe] }
  0x3a   : > { %v1352_v43 = vrot.slane %v1350_v22, 5  ;;  %3341 = vmatprep.mubr.msk.bf16.mxu0 %vm493_vm3, %v3022_v24  ;;  %v1347_v47 = vor.u32 %v1346_v34, %v1342_v20  ;;  %v381_v48 = vshll.u32 %v3922_v23, 16  ;;  %v385_v49 = vshrl.u32 %v3922_v23, 16 }
  0x3b   : > { %v1338_v46 = vrot.slane %v1337_v30, 4  ;;  %v370_v51 = vsel %vm3790_vm4, %v365_v40, %v369_v4  ;;  %v374_v53 = vrot.slane %v372_v42, 4  ;;  %v377_v54 = vrot.slane %v375_v45, 5  ;;  %v3950_v4 = vld [vmem:[%s3751_s5 + $0x40] sm:$0xf] }
  0x3c   : > { %v391_v55 = vshll.u32 %v3927_v39, 16  ;;  %v2906_v59 = vcombine.low %v360_v28, %v370_v51  ;;  %v1348_v2 = vrot.slane %v1347_v47, 4  ;;  %v383_v26 = vrot.slane %v381_v48, 5  ;;  %v3964_v30 = vld [vmem:[%s3751_s5 + $0x48] sm:$0xf] }
  0x3d   : > { %v1343_v0 = vsel %vm3790_vm4, %v1338_v46, %v1342_v20  ;;  %v378_v9 = vor.u32 %v377_v54, %v374_v53  ;;  %v387_v10 = vrot.slane %v385_v49, 4  ;;  %v3044_v13 = vrot.slane %v3036_v37, 9 }
  0x3e   : > { %v393_v12 = vrot.slane %v391_v55, 5  ;;  %3270 = vmatmul.mubr.msk.bf16.gmra.mrb[4].mxu1 %vm493_vm3, %v2906_v59  ;;  %v1353_v20 = vsel %vm3790_vm4, %v1348_v2, %v1352_v43  ;;  %v1652_v22 = vrot.slane %v1650_v62, 4  ;;  %v396_v24 = vshrl.u32 %v3939_v56, 16  ;;  %v3984_v55 = vld [vmem:[%s3751_s5 + $0x50] sm:$0x1] }
  0x3f   : > { %v399_v28 = vshll.u32 %v3939_v56, 16  ;;  %v3023_v34 = vcombine.low %v1343_v0, %v1353_v20  ;;  %v379_v40 = vrot.slane %v378_v9, 4  ;;  %v388_v42 = vor.u32 %v387_v10, %v383_v26 }
  0x40   : > { %v1651_v45 = vsel %vm3945_vm7, %v3044_v13, %v1650_v62  ;;  %v1654_v43 = vsel %vm3945_vm7, %v1652_v22, %v1653_v63  ;;  %v398_v46 = vrot.slane %v396_v24, 4  ;;  %v405_v48 = vshll.u32 %v3950_v4, 16  ;;  %v3980_v62 = vld [vmem:[%s3751_s5 + $0x4c] sm:$0xf] }
  0x41   : > { %v401_v47 = vrot.slane %v399_v28, 5  ;;  %3342 = vmatmul.mubr.msk.bf16.gmra.mrb[4].mxu0 %vm493_vm3, %v3023_v34  ;;  %v384_v49 = vsel %vm3790_vm4, %v379_v40, %v383_v26  ;;  %v389_v37 = vrot.slane %v388_v42, 4  ;;  %v3053_v15 = vcombine.low %v1651_v45, %v1654_v43  ;;  %v4002_v28 = vld [vmem:[%s3751_s5 + $0x54] sm:$0xf]  ;;  %v4013_v34 = vld [vmem:[%s4647_s1 + $0xe] sm:$0x3] }
  0x42   : > { %v409_v51 = vshrl.u32 %v3950_v4, 16  ;;  %v407_v53 = vrot.slane %v405_v48, 5  ;;  %v415_v63 = vshll.u32 %v3953_v18, 16  ;;  %v3045_v54 = vrot.slane %v3037_v17, 9 }
  0x43   : > { %v402_v16 = vor.u32 %v401_v47, %v398_v46  ;;  %v394_v59 = vsel %vm3790_vm4, %v389_v37, %v393_v12  ;;  %3355 = vmatprep.mubr.msk.bf16.mxu0 %vm493_vm3, %v3053_v15  ;;  %v1661_v2 = vsel %vm3945_vm7, %v3846_v35, %v1660_v33  ;;  %v420_v26 = vshrl.u32 %v3964_v30, 16  ;;  %v3038_v12 = vld [vmem:[%s3751_s5 + $0x24] sm:$0xe]  ;;  %v4018_v37 = vld [vmem:[%s3751_s5 + $0x58] sm:$0xf] }
  0x44   : > { %v411_v0 = vrot.slane %v409_v51, 4  ;;  %v2907_v9 = vcombine.low %v384_v49, %v394_v59  ;;  %v417_v13 = vrot.slane %v415_v63, 5  ;;  %v1658_v17 = vsel %vm3945_vm7, %v3045_v54, %v1657_v25  ;;  %v4027_v54 = vld [vmem:[%s3751_s5 + $0x5c] sm:$0x1] }
  0x45   : > { %v403_v10 = vrot.slane %v402_v16, 4  ;;  %v3054_v22 = vcombine.low %v1658_v17, %v1661_v2  ;;  %v422_v24 = vrot.slane %v420_v26, 4  ;;  %v423_v1 = vshll.u32 %v3964_v30, 16 }
  0x46   : > { %v412_v20 = vor.u32 %v411_v0, %v407_v53  ;;  %3273 = vmatprep.mubr.msk.bf16.mxu1 %vm493_vm3, %v2907_v9  ;;  %v429_v35 = vshll.u32 %v3980_v62, 16  ;;  %v433_v60 = vshrl.u32 %v3980_v62, 16  ;;  %v439_v25 = vshll.u32 %v3984_v55, 16 }
  0x47   : > { %v408_v33 = vsel %vm3790_vm4, %v403_v10, %v407_v53  ;;  %v425_v42 = vrot.slane %v423_v1, 5  ;;  %v3046_v45 = vrot.slane %v3038_v12, 9  ;;  %v1664_v43 = vrot.slane %v3859_v52, 5  ;;  %v3039_v10 = vld [vmem:[%s3751_s5 + $0x30] sm:$0xe] }
  0x48   : > { %v413_v40 = vrot.slane %v412_v20, 4  ;;  %v431_v46 = vrot.slane %v429_v35, 5  ;;  %v435_v47 = vrot.slane %v433_v60, 4  ;;  %v441_v48 = vrot.slane %v439_v25, 5 }
  0x49   : > { %v1667_v49 = vrot.slane %v3871_v61, 5  ;;  %3356 = vmatmul.mubr.msk.bf16.vlgmr.msra.gmra.mrb[0].mxu0 %vm493_vm3, %v3054_v22  ;;  %v426_v51 = vor.u32 %v425_v42, %v422_v24  ;;  %v1665_v16 = vsel %vm3945_vm7, %v3046_v45, %v1664_v43  ;;  %v1666_v53 = vrot.slane %v1664_v43, 4  ;;  %v4048_v42 = vld [vmem:[%s3751_s5 + $0x40] sm:$0xf]  ;;  %v4051_v45 = vld [vmem:[%s3751_s5 + $0x44] sm:$0x1] }
  0x4a   : > { %v418_v15 = vsel %vm3790_vm4, %v413_v40, %v417_v13  ;;  %3372 = vmatpush3.bf16.msra.mxu0 %v3802_v41  ;;  %v436_v52 = vor.u32 %v435_v47, %v431_v46  ;;  %v444_v61 = vshrl.u32 %v4002_v28, 16  ;;  %v447_v59 = vshll.u32 %v4002_v28, 16 }
  0x4b   : > { %v2908_v63 = vcombine.low %v408_v33, %v418_v15  ;;  %v427_v0 = vrot.slane %v426_v51, 4  ;;  %v1668_v2 = vsel %vm3945_vm7, %v1666_v53, %v1667_v49  ;;  %v453_v26 = vshll.u32 %v4018_v37, 16  ;;  %3563 = vmatprep.subr.msk.bf16.mxu0 %vm518_vm0, %v4013_v34  ;;  %v3040_v33 = vld [vmem:[%s3751_s5 + $0x3c] sm:$0xe] }
  0x4c   : > { %v457_v9 = vshrl.u32 %v4018_v37, 16  ;;  %v437_v41 = vrot.slane %v436_v52, 4  ;;  %v3055_v13 = vcombine.low %v1665_v16, %v1668_v2  ;;  %v446_v17 = vrot.slane %v444_v61, 4  ;;  %v3041_v2 = vld [vmem:[%s3751_s5 + $0x48] sm:$0xe] }
  0x4d   : > { %3274 = vmatmul.mubr.msk.bf16.gmra.mrb[8].mxu1 %vm493_vm3, %v2908_v63  ;;  %v449_v12 = vrot.slane %v447_v59, 5  ;;  %v432_v20 = vsel %vm3790_vm4, %v427_v0, %v431_v46  ;;  %v455_v22 = vrot.slane %v453_v26, 5  ;;  %v463_v1 = vshll.u32 %v4027_v54, 16  ;;  %v4066_v59 = vld [vmem:[%s3751_s5 + $0x4c] sm:$0xf] }
  0x4e   : > { %v459_v24 = vrot.slane %v457_v9, 4  ;;  %v442_v35 = vsel %vm3790_vm4, %v437_v41, %v441_v48  ;;  %3359 = vmatprep.mubr.msk.bf16.mxu0 %vm493_vm3, %v3055_v13  ;;  %v3047_v25 = vrot.slane %v3039_v10, 9  ;;  %v1671_v40 = vrot.slane %v3901_v50, 5  ;;  %v4069_v0 = vld [vmem:[%s3751_s5 + $0x50] sm:$0x1] }
  0x4f   : > { %v450_v60 = vor.u32 %v449_v12, %v446_v17  ;;  %v2909_v43 = vcombine.low %v432_v20, %v442_v35  ;;  %v465_v47 = vrot.slane %v463_v1, 5  ;;  %v1674_v49 = vrot.slane %v3911_v58, 5  ;;  %v4077_v17 = vld [vmem:[%s3751_s5 + $0x58] sm:$0xf]  ;;  %v4080_v12 = vld [vmem:[%s3751_s5 + $0x5c] sm:$0x1] }
  0x50   : > { %v460_v46 = vor.u32 %v459_v24, %v455_v22  ;;  %v1672_v48 = vsel %vm3945_vm7, %v3047_v25, %v1671_v40  ;;  %v1673_v51 = vrot.slane %v1671_v40, 4  ;;  %v3048_v16 = vrot.slane %v3040_v33, 9  ;;  %4659 = vst [vmem:[#allocation2_spill] sm:$0xff] %v4080_v12  ;;  %v4090_v35 = vld [vmem:[%s3751_s5 + $0x64] sm:$0xf] }
  0x51   : > { %v451_v15 = vrot.slane %v450_v60, 4  ;;  %3277 = vmatprep.mubr.msk.bf16.mxu1 %vm493_vm3, %v2909_v43  ;;  %v1678_v53 = vrot.slane %v4048_v42, 5  ;;  %v1681_v63 = vrot.slane %v4051_v45, 5  ;;  %v2919_v61 = vcombine.low %v3754_v6, %v3757_v7  ;;  %v3042_v6 = vld [vmem:[%s3751_s5 + $0x54] sm:$0xe]  ;;  %4660 = vst [vmem:[#allocation3_spill] sm:$0xff] %v4090_v35 }
  0x52   : > { %v461_v50 = vrot.slane %v460_v46, 4  ;;  %v1675_v58 = vsel %vm3945_vm7, %v1673_v51, %v1674_v49  ;;  %v1685_v24 = vrot.slane %v4066_v59, 5  ;;  %v1688_v1 = vrot.slane %v4069_v0, 5  ;;  %v4093_v60 = vld [vmem:[%s3751_s5 + $0x68] sm:$0x1] }
  0x53   : > { %v456_v52 = vsel %vm3790_vm4, %v451_v15, %v455_v22  ;;  %v3056_v9 = vcombine.low %v1672_v48, %v1675_v58  ;;  %v1679_v10 = vsel %vm3945_vm7, %v3048_v16, %v1678_v53  ;;  %v1680_v41 = vrot.slane %v1678_v53, 4  ;;  %4661 = vst [vmem:[#allocation4_spill] sm:$0xff] %v4093_v60 }
  0x54   : > { %v466_v26 = vsel %vm3790_vm4, %v461_v50, %v465_v47  ;;  %v3049_v22 = vrot.slane %v3041_v2, 9  ;;  %v1687_v40 = vrot.slane %v1685_v24, 4  ;;  %v3050_v43 = vrot.slane %v3042_v6, 9  ;;  %v3043_v47 = vld [vmem:[%s3751_s5 + $0x60] sm:$0xe] }
  0x55   : > { %v2910_v13 = vcombine.low %v456_v52, %v466_v26  ;;  %3360 = vmatmul.mubr.msk.bf16.gmra.mrb[4].mxu0 %vm493_vm3, %v3056_v9  ;;  %v1682_v20 = vsel %vm3945_vm7, %v1680_v41, %v1681_v63  ;;  %v1692_v46 = vrot.slane %v4077_v17, 5  ;;  %v819_v49 = vrot.slane %v3795_v36, 5  ;;  %v785_v2 = vld [vmem:[%s3751_s5 + $0x18] sm:$0xe]  ;;  %v4125_v6 = vld [vmem:[%s4647_s1 + $0x6] sm:$0x3] }
  0x56   : > { %v3057_v33 = vcombine.low %v1679_v10, %v1682_v20  ;;  %v1686_v25 = vsel %vm3945_vm7, %v3049_v22, %v1685_v24  ;;  %v1695_v15 = vrot.slane %v4080_v12, 5  ;;  %v1689_v48 = vsel %vm3945_vm7, %v1687_v40, %v1688_v1  ;;  %v787_v1 = vld [vmem:[%s3751_s5 + $0x30] sm:$0xe] }
  0x57   : > { %3278 = vmatmul.mubr.msk.bf16.gmra.mrb[12].mxu1 %vm493_vm3, %v2910_v13  ;;  %v1693_v51 = vsel %vm3945_vm7, %v3050_v43, %v1692_v46  ;;  %v1694_v16 = vrot.slane %v1692_v46, 4  ;;  %v1699_v50 = vrot.slane %v4090_v35, 5  ;;  %v2920_v53 = vcombine.low %v3786_v31, %v3795_v36  ;;  %v786_v36 = vld [vmem:[%s3751_s5 + $0x24] sm:$0xe]  ;;  %v4399_v12 = vld [vmem:[%s3751_s5 + $0x70] sm:$0xf] }
  0x58   : > { %3283 = vmatprep.mubr.msk.bf16.mxu1 %vm493_vm3, %v2919_v61  ;;  %3363 = vmatprep.mubr.msk.bf16.mxu0 %vm493_vm3, %v3057_v33  ;;  %v3058_v63 = vcombine.low %v1686_v25, %v1689_v48  ;;  %v3051_v52 = vrot.slane %v3043_v47, 9  ;;  %v1702_v58 = vrot.slane %v4093_v60, 5  ;;  %v784_v61 = vld [vmem:[%s3751_s5 + $0xc] sm:$0xe]  ;;  %v822_v26 = vrot.slane %v3805_v44, 5 }
  0x59   : > { %v2921_v9 = vcombine.low %v3834_v21, %v3841_v27  ;;  %v1696_v10 = vsel %vm3945_vm7, %v1694_v16, %v1695_v15  ;;  %v1701_v41 = vrot.slane %v1699_v50, 4  ;;  %v917_v13 = vsel %vm518_vm0, %v3865_v57, 0  ;;  %v3611_v16 = vld [vmem:[%s3751_s5 + $0x18] sm:$0xff]   ;;  %v4371_v60 = vld [vmem:[%s3751_s5 + $0x64] sm:$0xf] }
  0x5a   : > { %v3059_v31 = vcombine.low %v1693_v51, %v1696_v10  ;;  %v2936_v44 = vrot.slane %v784_v61, 9  ;;  %v821_v20 = vrot.slane %v819_v49, 4  ;;  %v2937_v21 = vrot.slane %v785_v2, 9  ;;  %4662 = vst [vmem:[#allocation5_spill] sm:$0xff] %v4371_v60 }
  0x5b   : > { %v1700_v22 = vsel %vm3945_vm7, %v3051_v52, %v1699_v50  ;;  %v1703_v57 = vsel %vm3945_vm7, %v1701_v41, %v1702_v58  ;;  %v826_v24 = vrot.slane %v3841_v27, 5  ;;  %v829_v40 = vrot.slane %v3849_v38, 5 }
  0x5c   : > { %v4138_v33 = vsel %vm3945_vm7, %v2936_v44, %v819_v49  ;;  %v4142_v25 = vsel %vm3945_vm7, %v821_v20, %v822_v26  ;;  %v2938_v43 = vrot.slane %v786_v36, 9  ;;  %v3060_v49 = vcombine.low %v1700_v22, %v1703_v57  ;;  %v3104_v26 = vld [vmem:[%s3751_s5 + $0x18] sm:$0xf]  ;;  %v3613_v57 = vld [vmem:[%s3751_s5 + $0x24] sm:$0xff]  }
  0x5d   : > { %3364 = vmatmul.mubr.msk.bf16.gmra.mrb[8].mxu0 %vm493_vm3, %v3058_v63  ;;  %v2945_v27 = vcombine.low %v4138_v33, %v4142_v25  ;;  %v4151_v46 = vsel %vm3945_vm7, %v2937_v21, %v826_v24  ;;  %v828_v47 = vrot.slane %v826_v24, 4  ;;  %v833_v15 = vrot.slane %v3881_v19, 5 }
  0x5e   : > { %3367 = vmatprep.mubr.msk.bf16.mxu0 %vm493_vm3, %v3059_v31  ;;  %v836_v48 = vrot.slane %v3891_v29, 5  ;;  %v2939_v38 = vrot.slane %v787_v1, 9  ;;  %v2922_v51 = vcombine.low %v3878_v11, %v3881_v19  ;;  %v843_v63 = vrot.slane %v3927_v39, 5  ;;  %v788_v19 = vld [vmem:[%s3751_s5 + $0x3c] sm:$0xe] }
  0x5f   : > { %3284 = vmatmul.mubr.msk.bf16.vlgmr.msra.gmra.mrb[0].mxu1 %vm493_vm3, %v2920_v53  ;;  %v4160_v50 = vsel %vm3945_vm7, %v828_v47, %v829_v40  ;;  %v840_v53 = vrot.slane %v3922_v23, 5  ;;  %v2923_v52 = vcombine.low %v3916_v14, %v3922_v23  ;;  %v4170_v58 = vsel %vm3945_vm7, %v2938_v43, %v833_v15  ;;  %v783_v14 = vld [vmem:[%s3751_s5] sm:$0xe]  ;;  %v4198_v31 = vld [vmem:[%s3751_s5 + $0x1c] sm:$0xf] }
  0x60   : > { %3300 = vmatpush3.bf16.msra.mxu1 %v917_v13  ;;  %3287 = vmatprep.mubr.msk.bf16.mxu1 %vm493_vm3, %v2921_v9  ;;  %v2946_v29 = vcombine.low %v4151_v46, %v4160_v50  ;;  %v835_v11 = vrot.slane %v833_v15, 4  ;;  %v812_v61 = vrot.slane %v3757_v7, 5  ;;  %v2940_v10 = vrot.slane %v788_v19, 9  ;;  %v789_v1 = vld [vmem:[%s3751_s5 + $0x48] sm:$0xe] }
  0x61   : > { %3558 = vmatprep.subr.msk.bf16.mxu1 %vm518_vm0, %v4125_v6  ;;  %v4176_v2 = vsel %vm3945_vm7, %v2939_v38, %v840_v53  ;;  %v842_v39 = vrot.slane %v840_v53, 4  ;;  %v815_v41 = vrot.slane %v3760_v8, 5  ;;  %v2935_v36 = vrot.slane %v783_v14, 9  ;;  %v4224_v38 = vld [vmem:[%s4647_s1 + $0x10] sm:$0x3] }
  0x62   : > { %v4182_v23 = vsel %vm3945_vm7, %v835_v11, %v836_v48  ;;  %v814_v44 = vrot.slane %v812_v61, 4  ;;  %v847_v20 = vrot.slane %v3950_v4, 5  ;;  %v850_v21 = vrot.slane %v3953_v18, 5  ;;  %v4245_v14 = vld [vmem:[%s3751_s5 + $0x28] sm:$0xf] }
  0x63   : > { %v4191_v9 = vsel %vm3945_vm7, %v842_v39, %v843_v63  ;;  %v2924_v22 = vcombine.low %v3939_v56, %v3950_v4  ;;  %v2097_v24 = vshrl.u32 %v3104_v26, 16  ;;  %v2100_v8 = vshll.u32 %v3104_v26, 16  ;;  %v3615_v4 = vld [vmem:[%s3751_s5 + $0x30] sm:$0xff]   ;;  %v4347_v46 = vld [vmem:[%s3751_s5 + $0x44] sm:$0x1] }
  0x64   : > { %v2106_v40 = vshll.u32 %v4198_v31, 16  ;;  %v2110_v43 = vshrl.u32 %v4198_v31, 16  ;;  %v4210_v47 = vsel %vm3945_vm7, %v2940_v10, %v847_v20  ;;  %v2339_v18 = vsel %vm518_vm0, %v4013_v34, 0  ;;  %v3122_v7 = vld [vmem:[%s3751_s5 + $0x60] sm:$0xf] }
  0x65   : > { %3368 = vmatmul.mubr.msk.bf16.gmra.mrb[12].mxu0 %vm493_vm3, %v3060_v49  ;;  %v849_v49 = vrot.slane %v847_v20, 4  ;;  %v2925_v56 = vcombine.low %v3964_v30, %v3980_v62  ;;  %v813_v15 = vsel %vm3945_vm7, %v2935_v36, %v812_v61  ;;  %v816_v48 = vsel %vm3945_vm7, %v814_v44, %v815_v41  ;;  %v4232_v30 = vld [vmem:[%s3751_s5 + $0x20] sm:$0x1]  ;;  %v3107_v61 = vld [vmem:[%s3751_s5 + $0x24] sm:$0xf] }
  0x66   : > { %3373 = vmatprep.mubr.msk.bf16.mxu0 %vm493_vm3, %v3611_v16  ;;  %v2941_v34 = vrot.slane %v789_v1, 9  ;;  %v2099_v16 = vrot.slane %v2097_v24, 4  ;;  %v2102_v53 = vrot.slane %v2100_v8, 5  ;;  %v4238_v11 = vrot.slane %v2106_v40, 5  ;;  %v790_v44 = vld [vmem:[%s3751_s5 + $0x54] sm:$0xe] }
  0x67   : > { %3288 = vmatmul.mubr.msk.bf16.gmra.mrb[4].mxu1 %vm493_vm3, %v2922_v51  ;;  %v4228_v51 = vsel %vm3945_vm7, %v849_v49, %v850_v21  ;;  %v2112_v19 = vrot.slane %v2110_v43, 4  ;;  %v857_v39 = vrot.slane %v3984_v55, 5  ;;  %v2926_v10 = vcombine.low %v4002_v28, %v4018_v37  ;;  %v3110_v55 = vld [vmem:[%s3751_s5 + $0x30] sm:$0xf]  ;;  %v3617_v20 = vld [vmem:[%s3751_s5 + $0x3c] sm:$0xff]   ;;  %v3618_v1 = vld [vmem:[%s3751_s5 + $0x48] sm:$0xff]  }
  0x68   : > { %3291 = vmatprep.mubr.msk.bf16.mxu1 %vm493_vm3, %v2923_v52  ;;  %v854_v52 = vrot.slane %v3980_v62, 5  ;;  %v2944_v41 = vcombine.low %v813_v15, %v816_v48  ;;  %v2116_v36 = vshll.u32 %v4232_v30, 16  ;;  %v2103_v21 = vor.u32 %v2102_v53, %v2099_v16  ;;  %v4264_v8 = vld [vmem:[%s3751_s5 + $0x34] sm:$0xf] }
  0x69   : > { %v2113_v28 = vor.u32 %v2112_v19, %v4238_v11  ;;  %v2130_v40 = vshll.u32 %v4245_v14, 16  ;;  %v2134_v43 = vshrl.u32 %v4245_v14, 16  ;;  %v861_v15 = vrot.slane %v4018_v37, 5 }
  0x6a   : > { %v4249_v62 = vsel %vm3945_vm7, %v2941_v34, %v854_v52  ;;  %v856_v26 = vrot.slane %v854_v52, 4  ;;  %v2154_v48 = vshll.u32 %v4264_v8, 16  ;;  %v2158_v34 = vshrl.u32 %v4264_v8, 16 }
  0x6b   : > { %v864_v16 = vrot.slane %v4027_v54, 5  ;;  %v2104_v53 = vrot.slane %v2103_v21, 4  ;;  %v2118_v52 = vrot.slane %v2116_v36, 5  ;;  %v2114_v37 = vrot.slane %v2113_v28, 4  ;;  %v4287_v36 = vld [vmem:[%s3751_s5 + $0x2c] sm:$0x1] }
  0x6c   : > { %v4261_v24 = vsel %vm3945_vm7, %v856_v26, %v857_v39  ;;  %v4283_v26 = vrot.slane %v2130_v40, 5  ;;  %v4294_v21 = vld [vmem:[%s3751_s5 + $0x38] sm:$0x1]  ;;  %v1119_v28 = vsel %vm518_vm0, %v4125_v6, 0 }
  0x6d   : > { %3374 = vmatmul.mubr.msk.bf16.vlgmr.msra.gmra.mrb[0].mxu0 %vm493_vm3, %v3613_v57  ;;  %v2124_v57 = vshll.u32 %v3107_v61, 16  ;;  %v3619_v40 = vld [vmem:[%s3751_s5 + $0x54] sm:$0xff]  }
  0x6e   : > { %3390 = vmatpush3.bf16.msra.mxu0 %v2339_v18  ;;  %3377 = vmatprep.mubr.msk.bf16.mxu0 %vm493_vm3, %v3615_v4  ;;  %v2145_v18 = vshrl.u32 %v3110_v55, 16  ;;  %v2942_v4 = vrot.slane %v790_v44, 9 }
  0x6f   : > { %3292 = vmatmul.mubr.msk.bf16.gmra.mrb[8].mxu1 %vm493_vm3, %v2924_v22  ;;  %3564 = vmatprep.subr.msk.bf16.mxu0 %vm518_vm0, %v4224_v38  ;;  %v2121_v22 = vshrl.u32 %v3107_v61, 16  ;;  %v863_v61 = vrot.slane %v861_v15, 4  ;;  %v2126_v54 = vrot.slane %v2124_v57, 5  ;;  %v2160_v57 = vrot.slane %v2158_v34, 4  ;;  %v3116_v34 = vld [vmem:[%s3751_s5 + $0x48] sm:$0xf] }
  0x70   : > { %3295 = vmatprep.mubr.msk.bf16.mxu1 %vm493_vm3, %v2925_v56  ;;  %v2148_v56 = vshll.u32 %v3110_v55, 16  ;;  %v4279_v19 = vsel %vm3945_vm7, %v2942_v4, %v861_v15  ;;  %v2136_v55 = vrot.slane %v2134_v43, 4  ;;  %v2147_v44 = vrot.slane %v2145_v18, 4  ;;  %v4305_v43 = vld [vmem:[%s3751_s5 + $0x40] sm:$0xf] }
  0x71   : > { %v2123_v39 = vrot.slane %v2121_v22, 4  ;;  %v4296_v22 = vrot.slane %v2154_v48, 5  ;;  %v3620_v18 = vld [vmem:[%s3751_s5 + $0x60] sm:$0xff]   ;;  %v2119_v4 = vsel %vm3790_vm4, %v2114_v37, %v2118_v52  ;;  %v2140_v48 = vshll.u32 %v4287_v36, 16 }
  0x72   : > { %v2193_v52 = vshrl.u32 %v3116_v34, 16  ;;  %v2196_v37 = vshll.u32 %v3116_v34, 16 }
  0x73   : > { %v2127_v15 = vor.u32 %v2126_v54, %v2123_v39  ;;  %v2161_v63 = vor.u32 %v2160_v57, %v4296_v22  ;;  %v3119_v57 = vld [vmem:[%s3751_s5 + $0x54] sm:$0xf] }
  0x74   : > { %v2195_v50 = vrot.slane %v2193_v52, 4  ;;  %v2220_v34 = vshll.u32 %v3119_v57, 16 }
  0x75   : > { %3378 = vmatmul.mubr.msk.bf16.gmra.mrb[4].mxu0 %vm493_vm3, %v3617_v20  ;;  %v2150_v20 = vrot.slane %v2148_v56, 5  ;;  %v2109_v56 = vsel %vm3790_vm4, %v2104_v53, %v4238_v11  ;;  %v2178_v11 = vshll.u32 %v4305_v43, 16  ;;  %v2182_v53 = vshrl.u32 %v4305_v43, 16 }
  0x76   : > { %3381 = vmatprep.mubr.msk.bf16.mxu0 %vm493_vm3, %v3618_v1  ;;  %v2164_v1 = vshll.u32 %v4294_v21, 16  ;;  %v3129_v54 = vcombine.low %v2109_v56, %v2119_v4  ;;  %v2162_v56 = vrot.slane %v2161_v63, 4  ;;  %v4352_v63 = vld [vmem:[%s3751_s5 + $0x50] sm:$0x1] }
  0x77   : > { %3296 = vmatmul.mubr.msk.bf16.gmra.mrb[12].mxu1 %vm493_vm3, %v2926_v10  ;;  %v4291_v10 = vsel %vm3945_vm7, %v863_v61, %v864_v16  ;;  %v4316_v16 = vld [vmem:[%s3751_s5 + $0x4c] sm:$0xf]  ;;  %v2137_v61 = vor.u32 %v2136_v55, %v4283_v26  ;;  %v2151_v6 = vor.u32 %v2150_v20, %v2147_v44  ;;  %v2128_v55 = vrot.slane %v2127_v15, 4 }
  0x78   : > { %3301 = vmatprep.mubr.msk.bf16.mxu1 %vm493_vm3, %v2944_v41  ;;  %v3113_v41 = vld [vmem:[%s3751_s5 + $0x3c] sm:$0xf]  ;;  %v2202_v39 = vshll.u32 %v4316_v16, 16  ;;  %v2142_v44 = vrot.slane %v2140_v48, 5  ;;  %v2206_v20 = vshrl.u32 %v4316_v16, 16  ;;  %v2166_v33 = vrot.slane %v2164_v1, 5 }
  0x79   : > { %v2169_v49 = vshrl.u32 %v3113_v41, 16  ;;  %v2172_v13 = vshll.u32 %v3113_v41, 16  ;;  %v2138_v41 = vrot.slane %v2137_v61, 4  ;;  %v4340_v15 = vrot.slane %v2178_v11, 5 }
  0x7a   : > { %v2184_v48 = vrot.slane %v2182_v53, 4  ;;  %v2217_v1 = vshrl.u32 %v3119_v57, 16  ;;  %v1388_v11 = vshll.u32 %v4066_v59, 16  ;;  %v2133_v53 = vsel %vm3790_vm4, %v2128_v55, %v4283_v26 }
  0x7b   : > { %v2171_v25 = vrot.slane %v2169_v49, 4  ;;  %v2174_v4 = vrot.slane %v2172_v13, 5  ;;  %v4349_v49 = vrot.slane %v2202_v39, 5  ;;  %v2208_v13 = vrot.slane %v2206_v20, 4 }
  0x7c   : > { %v2143_v52 = vsel %vm3790_vm4, %v2138_v41, %v2142_v44  ;;  %v2185_v57 = vor.u32 %v2184_v48, %v4340_v15  ;;  %v2167_v26 = vsel %vm3790_vm4, %v2162_v56, %v2166_v33  ;;  %v2219_v44 = vrot.slane %v2217_v1, 4  ;;  %v4390_v56 = vld [vmem:[%s3751_s5 + $0x5c] sm:$0x1] }
  0x7d   : > { %3382 = vmatmul.mubr.msk.bf16.gmra.mrb[8].mxu0 %vm493_vm3, %v3619_v40  ;;  %v2152_v40 = vrot.slane %v2151_v6, 4  ;;  %v2175_v20 = vor.u32 %v2174_v4, %v2171_v25  ;;  %v2209_v41 = vor.u32 %v2208_v13, %v4349_v49  ;;  %v4664_v33 = vcombine.low %v4176_v2, %v4191_v9 }
  0x7e   : > { %3385 = vmatprep.mubr.msk.bf16.mxu0 %vm493_vm3, %v3620_v18  ;;  %v3621_v18 = vld [vmem:[%s3751_s5 + $0x6c] sm:$0xff]   ;;  %v2241_v4 = vshrl.u32 %v3122_v7, 16  ;;  %v1392_v48 = vshrl.u32 %v4066_v59, 16  ;;  %v3130_v13 = vcombine.low %v2133_v53, %v2143_v52 }
  0x7f   : > { %3302 = vmatmul.mubr.msk.bf16.vlgmr.msra.gmra.mrb[0].mxu1 %vm493_vm3, %v2945_v27  ;;  %v4337_v27 = vld [vmem:[%s3751_s5 + $0x58] sm:$0xf]  ;;  %v2157_v39 = vsel %vm3790_vm4, %v2152_v40, %v4296_v22  ;;  %v4663_v22 = vcombine.low %v4170_v58, %v4182_v23  ;;  %v2222_v40 = vrot.slane %v2220_v34, 5  ;;  %v2244_v58 = vshll.u32 %v3122_v7, 16 }
  0x80   : > { %3318 = vmatpush3.bf16.msra.mxu1 %v1119_v28  ;;  %3305 = vmatprep.mubr.msk.bf16.mxu1 %vm493_vm3, %v2946_v29  ;;  %v3630_v28 = vld [vmem:[%s4647_s1 + $0x8] sm:$0x3]  ;;  %v2198_v29 = vrot.slane %v2196_v37, 5  ;;  %v2226_v61 = vshll.u32 %v4337_v27, 16  ;;  %v2230_v6 = vshrl.u32 %v4337_v27, 16  ;;  %v2593_v37 = vsel %vm518_vm0, %v4224_v38, 0 }
  0x81   : > { %3560 = vmatprep.subr.msk.bf16.mxu1 %vm518_vm0, %v3630_v28  ;;  %v2188_v28 = vshll.u32 %v4347_v46, 16  ;;  %v2212_v38 = vshll.u32 %v4352_v63, 16  ;;  %v2250_v23 = vshll.u32 %v4371_v60, 16  ;;  %v3131_v34 = vcombine.low %v2157_v39, %v2167_v26 }
  0x82   : > { %v2199_v55 = vor.u32 %v2198_v29, %v2195_v50  ;;  %v4383_v25 = vrot.slane %v2226_v61, 5  ;;  %v2176_v50 = vrot.slane %v2175_v20, 4  ;;  %v2186_v29 = vrot.slane %v2185_v57, 4 }
  0x83   : > { %v2190_v1 = vrot.slane %v2188_v28, 5  ;;  %v2214_v9 = vrot.slane %v2212_v38, 5  ;;  %v2210_v61 = vrot.slane %v2209_v41, 4  ;;  %v2236_v7 = vshll.u32 %v4390_v56, 16  ;;  %v4411_v28 = vld [vmem:[%s3751_s5 + $0x68] sm:$0x1] }
  0x84   : > { %v2200_v2 = vrot.slane %v2199_v55, 4  ;;  %v2243_v35 = vrot.slane %v2241_v4, 4  ;;  %v4401_v59 = vrot.slane %v2250_v23, 5  ;;  %v4403_v57 = vrot.slane %v1388_v11, 5 }
  0x85   : > { %3386 = vmatmul.mubr.msk.bf16.gmra.mrb[12].mxu0 %vm493_vm3, %v3621_v18  ;;  %v2232_v18 = vrot.slane %v2230_v6, 4  ;;  %v2223_v6 = vor.u32 %v2222_v40, %v2219_v44  ;;  %v1394_v53 = vrot.slane %v1392_v48, 4  ;;  %v2181_v52 = vsel %vm3790_vm4, %v2176_v50, %v4340_v15 }
  0x86   : > { %3391 = vmatprep.mubr.msk.bf16.mxu0 %vm493_vm3, %v3129_v54  ;;  %v2254_v54 = vshrl.u32 %v4371_v60, 16  ;;  %v2246_v60 = vrot.slane %v2244_v58, 5  ;;  %v2191_v39 = vsel %vm3790_vm4, %v2186_v29, %v2190_v1  ;;  %v2274_v38 = vshll.u32 %v4399_v12, 16  ;;  %v3622_v1 = vld [vmem:[%s3751_s5 + $0xc] sm:$0xff]  }
  0x87   : > { %3306 = vmatmul.mubr.msk.bf16.gmra.mrb[4].mxu1 %vm493_vm3, %v4663_v22  ;;  %v2233_v22 = vor.u32 %v2232_v18, %v4383_v25  ;;  %v2278_v44 = vshrl.u32 %v4399_v12, 16  ;;  %v4665_v11 = vcombine.low %v4210_v47, %v4228_v51  ;;  %v2205_v15 = vsel %vm3790_vm4, %v2200_v2, %v4349_v49 }
  0x88   : > { %3309 = vmatprep.mubr.msk.bf16.mxu1 %vm493_vm3, %v4664_v33  ;;  %v3125_v33 = vld [vmem:[%s3751_s5 + $0x6c] sm:$0xf]  ;;  %v2256_v20 = vrot.slane %v2254_v54, 4  ;;  %v2215_v41 = vsel %vm3790_vm4, %v2210_v61, %v2214_v9  ;;  %v2224_v40 = vrot.slane %v2223_v6, 4  ;;  %v2238_v18 = vrot.slane %v2236_v7, 5 }
  0x89   : > { %v2265_v26 = vshrl.u32 %v3125_v33, 16  ;;  %v2268_v55 = vshll.u32 %v3125_v33, 16  ;;  %v4666_v4 = vcombine.low %v4249_v62, %v4261_v24  ;;  %v2234_v47 = vrot.slane %v2233_v22, 4  ;;  %v3010_v22 = vld [vmem:[%s3751_s5 + $0x48] sm:$0xf] }
  0x8a   : > { %v2247_v51 = vor.u32 %v2246_v60, %v2243_v35  ;;  %v2260_v49 = vshll.u32 %v4411_v28, 16  ;;  %v1395_v58 = vor.u32 %v1394_v53, %v4403_v57  ;;  %v1398_v23 = vshll.u32 %v4069_v0, 16  ;;  %v4440_v60 = vld [vmem:[%s3751_s5 + $0x74] sm:$0x1] }
  0x8b   : > { %v3132_v54 = vcombine.low %v2181_v52, %v2191_v39  ;;  %v2267_v48 = vrot.slane %v2265_v26, 4  ;;  %v2270_v62 = vrot.slane %v2268_v55, 5  ;;  %v4434_v24 = vrot.slane %v2274_v38, 5 }
  0x8c   : > { %v2280_v50 = vrot.slane %v2278_v44, 4  ;;  %v3133_v29 = vcombine.low %v2205_v15, %v2215_v41  ;;  %v2229_v35 = vsel %vm3790_vm4, %v2224_v40, %v4383_v25  ;;  %v2248_v0 = vrot.slane %v2247_v51, 4  ;;  %v3624_v51 = vld [vmem:[%s3751_s5 + $0x24] sm:$0xff]  }
  0x8d   : > { %3392 = vmatmul.mubr.msk.bf16.vlgmr.msra.gmra.mrb[0].mxu0 %vm493_vm3, %v3130_v13  ;;  %v2239_v13 = vsel %vm3790_vm4, %v2234_v47, %v2238_v18  ;;  %v2262_v2 = vrot.slane %v2260_v49, 5  ;;  %v1396_v9 = vrot.slane %v1395_v58, 4  ;;  %v1400_v61 = vrot.slane %v1398_v23, 5 }
  0x8e   : > { %3408 = vmatpush3.bf16.msra.mxu0 %v2593_v37  ;;  %3395 = vmatprep.mubr.msk.bf16.mxu0 %vm493_vm3, %v3131_v34  ;;  %v2257_v37 = vor.u32 %v2256_v20, %v4401_v59  ;;  %v2488_v6 = vrot.slane %v4198_v31, 5  ;;  %v2271_v7 = vor.u32 %v2270_v62, %v2267_v48  ;;  %v2281_v33 = vor.u32 %v2280_v50, %v4434_v24  ;;  %v3145_v20 = vld [vmem:[%s3751_s5 + $0x18] sm:$0xe]  ;;  %v3147_v62 = vld [vmem:[%s3751_s5 + $0x30] sm:$0xe] }
  0x8f   : > { %3310 = vmatmul.mubr.msk.bf16.gmra.mrb[8].mxu1 %vm493_vm3, %v4665_v11  ;;  %v2284_v25 = vshll.u32 %v4440_v60, 16  ;;  %v4667_v53 = vcombine.low %v4279_v19, %v4291_v10  ;;  %v3134_v52 = vcombine.low %v2229_v35, %v2239_v13  ;;  %v2253_v31 = vsel %vm3790_vm4, %v2248_v0, %v4401_v59  ;;  %v3623_v59 = vld [vmem:[%s3751_s5 + $0x18] sm:$0xff]  }
  0x90   : > { %3313 = vmatprep.mubr.msk.bf16.mxu1 %vm493_vm3, %v4666_v4  ;;  %v2258_v34 = vrot.slane %v2257_v37, 4  ;;  %v1379_v26 = vshrl.u32 %v3010_v22, 16  ;;  %v1382_v55 = vshll.u32 %v3010_v22, 16  ;;  %v3153_v19 = vrot.slane %v3145_v20, 9  ;;  %v3007_v4 = vld [vmem:[%s3751_s5 + $0x3c] sm:$0xf] }
  0x91   : > { %v2490_v10 = vrot.slane %v2488_v6, 4  ;;  %v2491_v38 = vrot.slane %v4232_v30, 5  ;;  %v1401_v44 = vsel %vm3790_vm4, %v1396_v9, %v1400_v61  ;;  %v2272_v11 = vrot.slane %v2271_v7, 4  ;;  %v3146_v30 = vld [vmem:[%s3751_s5 + $0x24] sm:$0xe]  ;;  %v3625_v22 = vld [vmem:[%s3751_s5 + $0x30] sm:$0xff]  }
  0x92   : > { %v2263_v39 = vsel %vm3790_vm4, %v2258_v34, %v2262_v2  ;;  %v2282_v15 = vrot.slane %v2281_v33, 4  ;;  %v2286_v41 = vrot.slane %v2284_v25, 5  ;;  %v1381_v40 = vrot.slane %v1379_v26, 4  ;;  %v3626_v20 = vld [vmem:[%s3751_s5 + $0x3c] sm:$0xff]   ;;  %v3013_v26 = vld [vmem:[%s3751_s5 + $0x54] sm:$0xf] }
  0x93   : > { %v3135_v18 = vcombine.low %v2253_v31, %v2263_v39  ;;  %v1384_v47 = vrot.slane %v1382_v55, 5  ;;  %v2489_v37 = vsel %vm3945_vm7, %v3153_v19, %v2488_v6  ;;  %v2492_v49 = vsel %vm3945_vm7, %v2490_v10, %v2491_v38  ;;  %v3149_v38 = vld [vmem:[%s3751_s5 + $0x48] sm:$0xe] }
  0x94   : > { %v2495_v58 = vrot.slane %v4245_v14, 5  ;;  %v2287_v48 = vsel %vm3790_vm4, %v2282_v15, %v2286_v41  ;;  %v2502_v50 = vrot.slane %v4264_v8, 5  ;;  %v1358_v35 = vshll.u32 %v3007_v4, 16 }
  0x95   : > { %3396 = vmatmul.mubr.msk.bf16.gmra.mrb[4].mxu0 %vm493_vm3, %v3132_v54  ;;  %v1385_v23 = vor.u32 %v1384_v47, %v1381_v40  ;;  %v2277_v54 = vsel %vm3790_vm4, %v2272_v11, %v4434_v24  ;;  %v1364_v14 = vshll.u32 %v4048_v42, 16  ;;  %v3154_v24 = vrot.slane %v3146_v30, 9 }
  0x96   : > { %3399 = vmatprep.mubr.msk.bf16.mxu0 %vm493_vm3, %v3133_v29  ;;  %v1355_v29 = vshrl.u32 %v3007_v4, 16  ;;  %v2498_v8 = vrot.slane %v4287_v36, 5  ;;  %v3162_v0 = vcombine.low %v2489_v37, %v2492_v49  ;;  %v2497_v34 = vrot.slane %v2495_v58, 4  ;;  %v3627_v37 = vld [vmem:[%s3751_s5 + $0x48] sm:$0xff]  }
  0x97   : > { %3314 = vmatmul.mubr.msk.bf16.gmra.mrb[12].mxu1 %vm493_vm3, %v4667_v53  ;;  %v1386_v13 = vrot.slane %v1385_v23, 4  ;;  %v3155_v2 = vrot.slane %v3147_v62, 9  ;;  %v3136_v61 = vcombine.low %v2277_v54, %v2287_v48  ;;  %v2504_v6 = vrot.slane %v2502_v50, 4  ;;  %v3628_v23 = vld [vmem:[%s3751_s5 + $0x54] sm:$0xff]  }
  0x98   : > { %3319 = vmatprep.mubr.msk.bf16.mxu1 %vm493_vm3, %v3622_v1  ;;  %v1368_v1 = vshrl.u32 %v4048_v42, 16  ;;  %v2505_v42 = vrot.slane %v4294_v21, 5  ;;  %v1357_v7 = vrot.slane %v1355_v29, 4  ;;  %v1360_v33 = vrot.slane %v1358_v35, 5 }
  0x99   : > { %v1391_v9 = vsel %vm3790_vm4, %v1386_v13, %v4403_v57  ;;  %v4496_v25 = vrot.slane %v1364_v14, 5  ;;  %v2496_v53 = vsel %vm3945_vm7, %v3154_v24, %v2495_v58  ;;  %v2499_v57 = vsel %vm3945_vm7, %v2497_v34, %v2498_v8  ;;  %v3150_v24 = vld [vmem:[%s3751_s5 + $0x54] sm:$0xe]  ;;  %v4668_v8 = vld [vmem:[#allocation5_spill] sm:$0xff] }
  0x9a   : > { %v1370_v36 = vrot.slane %v1368_v1, 4  ;;  %v2503_v21 = vsel %vm3945_vm7, %v3155_v2, %v2502_v50  ;;  %v2509_v31 = vrot.slane %v4305_v43, 5  ;;  %v1374_v39 = vshll.u32 %v4051_v45, 16  ;;  %v3016_v50 = vld [vmem:[%s3751_s5 + $0x60] sm:$0xf] }
  0x9b   : > { %v2506_v55 = vsel %vm3945_vm7, %v2504_v6, %v2505_v42  ;;  %v1361_v19 = vor.u32 %v1360_v33, %v1357_v7  ;;  %v3163_v43 = vcombine.low %v2496_v53, %v2499_v57  ;;  %v2512_v11 = vrot.slane %v4347_v46, 5  ;;  %v4670_v33 = vld [vmem:[#allocation2_spill] sm:$0xff] }
  0x9c   : > { %v1371_v10 = vor.u32 %v1370_v36, %v4496_v25  ;;  %v1403_v15 = vshrl.u32 %v3013_v26, 16  ;;  %v1406_v41 = vshll.u32 %v3013_v26, 16  ;;  %v1412_v40 = vshll.u32 %v4077_v17, 16 }
  0x9d   : > { %3400 = vmatmul.mubr.msk.bf16.gmra.mrb[8].mxu0 %vm493_vm3, %v3134_v52  ;;  %v3148_v52 = vld [vmem:[%s3751_s5 + $0x3c] sm:$0xe]  ;;  %v2511_v4 = vrot.slane %v2509_v31, 4  ;;  %v1376_v47 = vrot.slane %v1374_v39, 5  ;;  %v2519_v58 = vrot.slane %v4352_v63, 5  ;;  %v2523_v63 = vrot.slane %v4337_v27, 5 }
  0x9e   : > { %3403 = vmatprep.mubr.msk.bf16.mxu0 %vm493_vm3, %v3135_v18  ;;  %v3156_v45 = vrot.slane %v3148_v52, 9  ;;  %v3164_v18 = vcombine.low %v2503_v21, %v2506_v55  ;;  %v1372_v49 = vrot.slane %v1371_v10, 4  ;;  %v1405_v46 = vrot.slane %v1403_v15, 4  ;;  %v3151_v27 = vld [vmem:[%s3751_s5 + $0x60] sm:$0xe] }
  0x9f   : > { %3320 = vmatmul.mubr.msk.bf16.vlgmr.msra.gmra.mrb[0].mxu1 %vm493_vm3, %v3623_v59  ;;  %v1416_v59 = vshrl.u32 %v4077_v17, 16  ;;  %v1408_v54 = vrot.slane %v1406_v41, 5  ;;  %v1414_v48 = vrot.slane %v1412_v40, 5  ;;  %v2513_v29 = vsel %vm3945_vm7, %v2511_v4, %v2512_v11  ;;  %v3629_v52 = vld [vmem:[%s3751_s5 + $0x60] sm:$0xff]  }
  0xa0   : > { %3426 = vmatpush3.bf16.msra.mxu1 %v3733_v3  ;;  %3323 = vmatprep.mubr.msk.bf16.mxu1 %vm493_vm3, %v3624_v51  ;;  %v4493_v3 = vcombine.low %v1391_v9, %v1401_v44  ;;  %v2516_v44 = vrot.slane %v4316_v16, 5  ;;  %v3157_v51 = vrot.slane %v3149_v38, 9  ;;  %v1362_v16 = vrot.slane %v1361_v19, 4  ;;  %v4669_v9 = vld [vmem:[#allocation3_spill] sm:$0xff] }
  0xa1   : > { %v1418_v62 = vrot.slane %v1416_v59, 4  ;;  %v2510_v17 = vsel %vm3945_vm7, %v3156_v45, %v2509_v31  ;;  %v1377_v1 = vsel %vm3790_vm4, %v1372_v49, %v1376_v47  ;;  %v1427_v34 = vshrl.u32 %v3016_v50, 16  ;;  %v3152_v47 = vld [vmem:[%s3751_s5 + $0x6c] sm:$0xe] }
  0xa2   : > { %v2518_v30 = vrot.slane %v2516_v44, 4  ;;  %v2517_v35 = vsel %vm3945_vm7, %v3157_v51, %v2516_v44  ;;  %v1367_v14 = vsel %vm3790_vm4, %v1362_v16, %v4496_v25  ;;  %v1430_v2 = vshll.u32 %v3016_v50, 16 }
  0xa3   : > { %v1440_v6 = vshrl.u32 %v4669_v9, 16  ;;  %v3165_v42 = vcombine.low %v2510_v17, %v2513_v29  ;;  %v1419_v7 = vor.u32 %v1418_v62, %v1414_v48  ;;  %v1422_v25 = vshll.u32 %v4670_v33, 16 }
  0xa4   : > { %v2520_v13 = vsel %vm3945_vm7, %v2518_v30, %v2519_v58  ;;  %v2525_v53 = vrot.slane %v2523_v63, 4  ;;  %v2526_v57 = vrot.slane %v4390_v56, 5  ;;  %v3024_v21 = vcombine.low %v1367_v14, %v1377_v1 }
  0xa5   : > { %3404 = vmatmul.mubr.msk.bf16.gmra.mrb[12].mxu0 %vm493_vm3, %v3136_v61  ;;  %v1436_v61 = vshll.u32 %v4669_v9, 16  ;;  %v3166_v36 = vcombine.low %v2517_v35, %v2520_v13  ;;  %v3159_v31 = vrot.slane %v3151_v27, 9  ;;  %v2533_v26 = vrot.slane %v4411_v28, 5 }
  0xa6   : > { %3409 = vmatprep.mubr.msk.bf16.mxu0 %vm493_vm3, %v3162_v0  ;;  %v2530_v0 = vrot.slane %v4668_v8, 5  ;;  %v1429_v55 = vrot.slane %v1427_v34, 4  ;;  %v1432_v19 = vrot.slane %v1430_v2, 5  ;;  %v1442_v38 = vrot.slane %v1440_v6, 4 }
  0xa7   : > { %3324 = vmatmul.mubr.msk.bf16.gmra.mrb[4].mxu1 %vm493_vm3, %v3625_v22  ;;  %v1409_v22 = vor.u32 %v1408_v54, %v1405_v46  ;;  %v1438_v10 = vrot.slane %v1436_v61, 5  ;;  %v1424_v45 = vrot.slane %v1422_v25, 5  ;;  %v2527_v28 = vsel %vm3945_vm7, %v2525_v53, %v2526_v57 }
  0xa8   : > { %3327 = vmatprep.mubr.msk.bf16.mxu1 %vm493_vm3, %v3626_v20  ;;  %v3158_v20 = vrot.slane %v3150_v24, 9  ;;  %v2532_v39 = vrot.slane %v2530_v0, 4  ;;  %v2531_v11 = vsel %vm3945_vm7, %v3159_v31, %v2530_v0  ;;  %v2537_v15 = vrot.slane %v4399_v12, 5  ;;  %v4592_v0 = vld [vmem:[%s4648_s2] ss:$0 sm:$0xff] }
  0xa9   : > { %v1410_v44 = vrot.slane %v1409_v22, 4  ;;  %v1433_v40 = vor.u32 %v1432_v19, %v1429_v55  ;;  %v1443_v59 = vor.u32 %v1442_v38, %v1438_v10  ;;  %v3160_v30 = vrot.slane %v3152_v47, 9 }
  0xaa   : > { %v2524_v56 = vsel %vm3945_vm7, %v3158_v20, %v2523_v63  ;;  %v2534_v41 = vsel %vm3945_vm7, %v2532_v39, %v2533_v26  ;;  %v2539_v12 = vrot.slane %v2537_v15, 4  ;;  %v2540_v58 = vrot.slane %v4440_v60, 5 }
  0xab   : > { %v1415_v51 = vsel %vm3790_vm4, %v1410_v44, %v1414_v48  ;;  %v3167_v16 = vcombine.low %v2524_v56, %v2527_v28  ;;  %v3168_v49 = vcombine.low %v2531_v11, %v2534_v41  ;;  %v1434_v46 = vrot.slane %v1433_v40, 4 }
  0xac   : > { %v1444_v54 = vrot.slane %v1443_v59, 4  ;;  %v2538_v48 = vsel %vm3945_vm7, %v3160_v30, %v2537_v15  ;;  %v2541_v50 = vsel %vm3945_vm7, %v2539_v12, %v2540_v58 }
  0xad   : > { %3410 = vmatmul.mubr.msk.bf16.vlgmr.msra.gmra.mrb[0].mxu0 %vm493_vm3, %v3163_v43  ;;  %v1420_v43 = vrot.slane %v1419_v7, 4  ;;  %v1439_v60 = vsel %vm3790_vm4, %v1434_v46, %v1438_v10  ;;  %v3169_v29 = vcombine.low %v2538_v48, %v2541_v50 }
  0xae   : > { %3413 = vmatprep.mubr.msk.bf16.mxu0 %vm493_vm3, %v3164_v18  ;;  %v4671_v18 = vld [vmem:[#allocation4_spill] sm:$0xff] }
  0xaf   : > { %3328 = vmatmul.mubr.msk.bf16.gmra.mrb[8].mxu1 %vm493_vm3, %v3627_v37  ;;  %v1446_v4 = vshll.u32 %v4671_v18, 16  ;;  %v1425_v37 = vsel %vm3790_vm4, %v1420_v43, %v1424_v45 }
  0xb0   : > { %3331 = vmatprep.mubr.msk.bf16.mxu1 %vm493_vm3, %v3628_v23  ;;  %v3026_v23 = vcombine.low %v1415_v51, %v1425_v37 }
  0xb1   : > { %v1448_v62 = vrot.slane %v1446_v4, 5 }
  0xb3   : > { %v1449_v17 = vsel %vm3790_vm4, %v1444_v54, %v1448_v62 }
  0xb4   : > { %v3027_v35 = vcombine.low %v1439_v60, %v1449_v17 }
  0xb5   : > { %3414 = vmatmul.mubr.msk.bf16.gmra.mrb[4].mxu0 %vm493_vm3, %v3165_v42 }
  0xb6   : > { %3417 = vmatprep.mubr.msk.bf16.mxu0 %vm493_vm3, %v3166_v36 }
  0xb7   : > { %3332 = vmatmul.mubr.msk.bf16.gmra.mrb[12].mxu1 %vm493_vm3, %v3629_v52 }
  0xb8   : > { %3345 = vmatprep.mubr.msk.bf16.mxu1 %vm493_vm3, %v3024_v21 }
  0xbd   : > { %3418 = vmatmul.mubr.msk.bf16.gmra.mrb[8].mxu0 %vm493_vm3, %v3167_v16 }
  0xbe   : > { %3421 = vmatprep.mubr.msk.bf16.mxu0 %vm493_vm3, %v3168_v49 }
  0xbf   : > { %3346 = vmatmul.mubr.msk.bf16.vlgmr.msra.gmra.mrb[8].mxu1 %vm493_vm3, %v4493_v3 }
  0xc0   : > { %3349 = vmatprep.mubr.msk.bf16.mxu1 %vm493_vm3, %v3026_v23 }
  0xc5   : > { %3422 = vmatmul.mubr.msk.bf16.gmra.mrb[12].mxu0 %vm493_vm3, %v3169_v29 }
  0xc7   : > { %3350 = vmatmul.mubr.msk.bf16.gmra.mrb[12].mxu1 %vm493_vm3, %v3027_v35 }
 0x172   : > { %v3321_v3 = vpop.f32.mrb[0].mxu1 }
 0x173   : > { %v1155_v5 = vpop.f32.mrb[1].mxu1 }
 0x174   : > { %v3322_v63 = vpop.f32.mrb[2].mxu1 }
 0x175   : > { %v1158_v14 = vpop.f32.mrb[3].mxu1 }
 0x17a   : > { %v3325_v1 = vpop.f32.mrb[4].mxu1 }
 0x17b   : > { %v1171_v13 = vpop.f32.mrb[5].mxu1 }
 0x17c   : > { %v3326_v24 = vpop.f32.mrb[6].mxu1 }
 0x17d   : > { %v1174_v32 = vpop.f32.mrb[7].mxu1 }
 0x180   : > { %v3411_v8 = vpop.f32.mrb[0].mxu0 }
 0x181   : > { %v3427_v27 = vadd.f32 %v3411_v8, %v3321_v3  ;;  %v2629_v34 = vpop.f32.mrb[1].mxu0 }
 0x182   : > { %v3428_v2 = vadd.f32 %v2629_v34, %v1155_v5  ;;  %v3412_v9 = vpop.f32.mrb[2].mxu0 }
 0x183   : > { %v2717_v61 = vadd.f32 %v3427_v27, %v4592_v0  ;;  %v3429_v6 = vadd.f32 %v3412_v9, %v3322_v63  ;;  %v2632_v42 = vpop.f32.mrb[3].mxu0 }
 0x184   : > { %v2715_v22 = vadd.f32 %v3428_v2, %v4592_v0  ;;  %v3430_v7 = vadd.f32 %v2632_v42, %v1158_v14 }
 0x185   : > { %2733 = vst [vmem:[%s4597_s6 + $0x10] sm:$0xff] %v2717_v61  ;;  %v2718_v33 = vadd.f32 %v3429_v6, %v4592_v0 }
 0x186   : > { %2731 = vst [vmem:[%s4597_s6] sm:$0xff] %v2715_v22  ;;  %v2716_v25 = vadd.f32 %v3430_v7, %v4592_v0 }
 0x187   : > { %2734 = vst [vmem:[%s4597_s6 + $0x18] sm:$0xff] %v2718_v33 }
 0x188   : > { %2732 = vst [vmem:[%s4597_s6 + $0x8] sm:$0xff] %v2716_v25  ;;  %v3415_v36 = vpop.f32.mrb[4].mxu0 }
 0x189   : > { %v3431_v20 = vadd.f32 %v3415_v36, %v3325_v1  ;;  %v2645_v53 = vpop.f32.mrb[5].mxu0 }
 0x18a   : > { %v3432_v57 = vadd.f32 %v2645_v53, %v1171_v13  ;;  %v3416_v52 = vpop.f32.mrb[6].mxu0 }
 0x18b   : > { %v2721_v21 = vadd.f32 %v3431_v20, %v4592_v0  ;;  %v3433_v31 = vadd.f32 %v3416_v52, %v3326_v24  ;;  %v2648_v39 = vpop.f32.mrb[7].mxu0 }
 0x18c   : > { %v2719_v26 = vadd.f32 %v3432_v57, %v4592_v0  ;;  %v3434_v55 = vadd.f32 %v2648_v39, %v1174_v32 }
 0x18d   : > { %2737 = vst [vmem:[%s4597_s6 + $0x30] sm:$0xff] %v2721_v21  ;;  %v2722_v19 = vadd.f32 %v3433_v31, %v4592_v0 }
 0x18e   : > { %2735 = vst [vmem:[%s4597_s6 + $0x20] sm:$0xff] %v2719_v26  ;;  %v2720_v10 = vadd.f32 %v3434_v55, %v4592_v0 }
 0x18f   : > { %2738 = vst [vmem:[%s4597_s6 + $0x38] sm:$0xff] %v2722_v19 }
 0x190   : > { %2736 = vst [vmem:[%s4597_s6 + $0x28] sm:$0xff] %v2720_v10  ;;  %v3419_v38 = vpop.f32.mrb[8].mxu0 }
 0x191   : > { %v2661_v43 = vpop.f32.mrb[9].mxu0 }
 0x192   : > { %v3347_v44 = vpop.f32.mrb[8].mxu1  ;;  %v3420_v28 = vpop.f32.mrb[10].mxu0 }
 0x193   : > { %v3435_v45 = vadd.f32 %v3419_v38, %v3347_v44  ;;  %v1569_v56 = vpop.f32.mrb[9].mxu1  ;;  %v2664_v41 = vpop.f32.mrb[11].mxu0 }
 0x194   : > { %v3436_v11 = vadd.f32 %v2661_v43, %v1569_v56  ;;  %v3348_v15 = vpop.f32.mrb[10].mxu1 }
 0x195   : > { %v2725_v40 = vadd.f32 %v3435_v45, %v4592_v0  ;;  %v3437_v59 = vadd.f32 %v3420_v28, %v3348_v15  ;;  %v1572_v18 = vpop.f32.mrb[11].mxu1 }
 0x196   : > { %v2723_v4 = vadd.f32 %v3436_v11, %v4592_v0  ;;  %v3438_v47 = vadd.f32 %v2664_v41, %v1572_v18 }
 0x197   : > { %2741 = vst [vmem:[%s4597_s6 + $0x50] sm:$0xff] %v2725_v40  ;;  %v2726_v51 = vadd.f32 %v3437_v59, %v4592_v0 }
 0x198   : > { %2739 = vst [vmem:[%s4597_s6 + $0x40] sm:$0xff] %v2723_v4  ;;  %v2724_v37 = vadd.f32 %v3438_v47, %v4592_v0  ;;  %v3423_v16 = vpop.f32.mrb[12].mxu0 }
 0x199   : > { %2742 = vst [vmem:[%s4597_s6 + $0x58] sm:$0xff] %v2726_v51  ;;  %v2677_v30 = vpop.f32.mrb[13].mxu0 }
 0x19a   : > { %2740 = vst [vmem:[%s4597_s6 + $0x48] sm:$0xff] %v2724_v37  ;;  %v3351_v49 = vpop.f32.mrb[12].mxu1  ;;  %v3424_v23 = vpop.f32.mrb[14].mxu0 }
 0x19b   : > { %v3439_v12 = vadd.f32 %v3423_v16, %v3351_v49  ;;  %v1585_v58 = vpop.f32.mrb[13].mxu1  ;;  %v2680_v62 = vpop.f32.mrb[15].mxu0 }
 0x19c   : > { %v3440_v46 = vadd.f32 %v2677_v30, %v1585_v58  ;;  %v3352_v54 = vpop.f32.mrb[14].mxu1 }
 0x19d   : > { %v2729_v48 = vadd.f32 %v3439_v12, %v4592_v0  ;;  %v3441_v50 = vadd.f32 %v3424_v23, %v3352_v54  ;;  %v1588_v60 = vpop.f32.mrb[15].mxu1 }
 0x19e   : > { %v2727_v17 = vadd.f32 %v3440_v46, %v4592_v0  ;;  %v3442_v29 = vadd.f32 %v2680_v62, %v1588_v60 }
 0x19f   : > { %2745 = vst [vmem:[%s4597_s6 + $0x70] sm:$0xff] %v2729_v48  ;;  %v2730_v35 = vadd.f32 %v3441_v50, %v4592_v0 }
 0x1a0   : > { %2743 = vst [vmem:[%s4597_s6 + $0x60] sm:$0xff] %v2727_v17  ;;  %v2728_v3 = vadd.f32 %v3442_v29, %v4592_v0 }
 0x1a1   : > { %2746 = vst [vmem:[%s4597_s6 + $0x78] sm:$0xff] %v2730_v35 }
 0x1a2   : > { %2744 = vst [vmem:[%s4597_s6 + $0x68] sm:$0xff] %v2728_v3 }
 0x1a3 PF: > { %s13_s16 = sadd.s32 1, %s3669_s16   ;;  %s4672_s12 = smov %s3661_s14 }
 0x1a4   : > { %p10_p7 = scmp.ge.s32.totalorder %s13_s16, 6   ;;  %s4673_s13 = smov %s3665_s15 }
 0x1a5   : > { %s4674_s14 = smov %s4677_s17  ;;  %s4675_s15 = smov %s4681_s18 }
 0x1a6   :  { %12 = sbr.rel (!%p10_p7) target bundleno = 3 (0x3), region = 79 }

</bundles_post_ra>
